<compile_context>
chip_gen: v7x
topology: tpu7x:2x2x1
jax: 0.10.0
libtpu: 0.0.40
codegen_flags: <defaults>
</compile_context>

<pallas_src>
import functools

import jax
import jax.numpy as jnp
from jax.experimental import pallas as pl
from jax.experimental.pallas import tpu as pltpu


# ------------------------------ Fused kernel ------------------------------- #

def _final_layer_kernel(x_ref, c_ref, w_ada_ref, b_ada_ref, w_lin_ref, b_lin_ref,
                        o_ref, mod_scratch, *, eps):
    C = x_ref.shape[-1]

    # --- adaLN_modulation: SiLU(c) @ W_ada + b_ada (once per batch row) ----- #
    # Only the first N-tile of each batch row computes it; the result persists
    # in VMEM scratch for the remaining tiles (token axis is "arbitrary").
    @pl.when(pl.program_id(1) == 0)
    def _():
        c = c_ref[...].astype(jnp.float32)                     # (1, C)
        silu_c = c * jax.nn.sigmoid(c)                         # VPU + EUP
        mod_scratch[...] = (
            jnp.dot(silu_c.astype(jnp.bfloat16), w_ada_ref[...],
                    preferred_element_type=jnp.float32)
            + b_ada_ref[...])                                  # (1, 2C) f32

    shift = mod_scratch[:, :C]                                 # (1, C)
    scale = mod_scratch[:, C:]                                 # (1, C)

    # --- LayerNorm (no affine, eps) in f32, single-pass statistics ---------- #
    x = x_ref[...].astype(jnp.float32)                         # (TN, C)
    inv_c = 1.0 / C
    s1 = jnp.sum(x, axis=-1, keepdims=True)
    s2 = jnp.sum(x * x, axis=-1, keepdims=True)
    mean = s1 * inv_c
    var = s2 * inv_c - mean * mean
    x_hat = (x - mean) * jax.lax.rsqrt(var + eps)              # EUP rsqrt

    # --- modulate + final projection (bf16 MXU operands, f32 accumulate) ---- #
    x_mod = x_hat * (scale + 1.0) + shift                      # row-broadcast
    out = jnp.dot(x_mod.astype(jnp.bfloat16), w_lin_ref[...],
                  preferred_element_type=jnp.float32) + b_lin_ref[...]   # (TN, Kp)
    o_ref[...] = out.astype(o_ref.dtype)


# -------------------------------- Wrapper ----------------------------------- #

def final_layer_forward(x, c, params, *, eps=1e-6, tile_n=256):
    """x: (B, N, C), c: (B, C). Weights stored as (in, out) = W^T."""
    B, N, C = x.shape
    K = params["w_lin"].shape[1]

    # Lane-dense output: pad K up to a multiple of 128 (unmasked full-width vst).
    Kp = ((K + 127) // 128) * 128

    # Token-axis tile: multiple of 8, pad N up to a multiple of the tile.
    tn = min(tile_n, N)
    if tn < N:
        tn = max(8, (tn // 8) * 8)
    Np = ((N + tn - 1) // tn) * tn
    xp = x if Np == N else jnp.pad(x, ((0, 0), (0, Np - N), (0, 0)))

    # Weights in bf16 (MXU-native everywhere; avoids emulated f32 matmul on v5e);
    # biases stay f32 and are added to the f32 accumulator.
    w_ada = params["w_ada"].astype(jnp.bfloat16)
    b_ada = params["b_ada"].reshape(1, 2 * C).astype(jnp.float32)
    w_lin = params["w_lin"]
    b_lin = params["b_lin"]
    if Kp != K:
        w_lin = jnp.pad(w_lin, ((0, 0), (0, Kp - K)))
        b_lin = jnp.pad(b_lin, (0, Kp - K))
    w_lin = w_lin.astype(jnp.bfloat16)
    b_lin = b_lin.reshape(1, Kp).astype(jnp.float32)

    c3 = c.reshape(B, 1, C)

    # VMEM budget: double-buffered x/out streams + single-buffered bf16 weights.
    xb = x.dtype.itemsize
    stream_bytes = 2 * tn * (C + Kp) * xb
    weight_bytes = (C * 2 * C + C * Kp) * 2
    small_bytes = 2 * C * c.dtype.itemsize + 2 * (2 * C + Kp) * 4 + 2 * C * 4
    vmem_limit = int(2 * (stream_bytes + weight_bytes + small_bytes)) + (8 << 20)
    vmem_limit = max(32 << 20, min(vmem_limit, 96 << 20))

    flops = (B * 2 * C * (2 * C)            # adaLN GEMV (once per batch row)
             + B * Np * 2 * C * Kp          # final projection
             + B * Np * 10 * C)             # LN + modulate elementwise
    transcendentals = B * (C + Np)          # sigmoid + rsqrt
    bytes_accessed = (B * Np * C * xb + B * C * c.dtype.itemsize
                      + (C * 2 * C + C * Kp) * 2 + (2 * C + Kp) * 4
                      + B * Np * Kp * xb)

    kernel = functools.partial(_final_layer_kernel, eps=eps)
    out = pl.pallas_call(
        kernel,
        out_shape=jax.ShapeDtypeStruct((B, Np, Kp), x.dtype),
        grid=(B, Np // tn),
        in_specs=[
            pl.BlockSpec((None, tn, C), lambda b, j: (b, j, 0)),   # x tile  -> (tn, C)
            pl.BlockSpec((None, 1, C),  lambda b, j: (b, 0, 0)),   # c       -> (1, C)
            pl.BlockSpec((C, 2 * C),    lambda b, j: (0, 0),
                         pipeline_mode=pl.Buffered(1)),            # W_ada (resident)
            pl.BlockSpec((1, 2 * C),    lambda b, j: (0, 0)),      # b_ada
            pl.BlockSpec((C, Kp),       lambda b, j: (0, 0),
                         pipeline_mode=pl.Buffered(1)),            # W_lin (resident)
            pl.BlockSpec((1, Kp),       lambda b, j: (0, 0)),      # b_lin
        ],
        out_specs=pl.BlockSpec((None, tn, Kp), lambda b, j: (b, j, 0)),
        scratch_shapes=[pltpu.VMEM((1, 2 * C), jnp.float32)],      # shift|scale carry
        compiler_params=pltpu.CompilerParams(
            # Batch axis parallel (v7x megacore); token axis must be sequential
            # because shift/scale live in scratch across the N-tiles of a row.
            dimension_semantics=("parallel", "arbitrary"),
            vmem_limit_bytes=vmem_limit),
        cost_estimate=pl.CostEstimate(
            flops=flops,
            transcendentals=transcendentals,
            bytes_accessed=bytes_accessed),
    )(xp, c3, w_ada, b_ada, w_lin, b_lin)

    if Np != N:
        out = out[:, :N]
    if Kp != K:
        out = out[..., :K]
    return out


# ------------------------------- Reference --------------------------------- #

def _reference(x, c, params, eps=1e-6):
    C = x.shape[-1]
    mod = jax.nn.silu(c) @ params["w_ada"] + params["b_ada"]     # (B, 2C)
    shift, scale = mod[:, :C], mod[:, C:]
    mean = jnp.mean(x, axis=-1, keepdims=True)
    var = jnp.mean((x - mean) ** 2, axis=-1, keepdims=True)
    x_hat = (x - mean) / jnp.sqrt(var + eps)
    x_mod = x_hat * (scale[:, None, :] + 1.0) + shift[:, None, :]
    return x_mod @ params["w_lin"] + params["b_lin"]


# --------------------------------- Main ------------------------------------ #

if __name__ == "__main__":
    # Small but multi-tile shapes: hidden=128, num_patch=4, out_channels=32 -> K=128.
    # N=512 with tile_n=256 exercises the 2-D grid + scratch carry (grid = (2, 2)).
    hidden_size = 128
    num_patch = 4
    out_channels = 32
    B, N = 2, 512
    K = num_patch * out_channels

    key = jax.random.PRNGKey(0)
    ks = jax.random.split(key, 6)

    # Linear weights stored transposed: (in, out).
    params = {
        "w_ada": 0.02 * jax.random.normal(ks[0], (hidden_size, 2 * hidden_size), jnp.float32),
        "b_ada": 0.02 * jax.random.normal(ks[1], (2 * hidden_size,), jnp.float32),
        "w_lin": 0.02 * jax.random.normal(ks[2], (hidden_size, K), jnp.float32),
        "b_lin": 0.02 * jax.random.normal(ks[3], (K,), jnp.float32),
    }

    x = jax.random.normal(ks[4], (B, N, hidden_size), jnp.float32)
    c = jax.random.normal(ks[5], (B, hidden_size), jnp.float32)

    out = final_layer_forward(x, c, params, tile_n=256)
    out = jax.block_until_ready(out)

    ref = _reference(x, c, params)
    assert out.shape == (B, N, K), out.shape
    max_err = jnp.max(jnp.abs(out - ref))
    # bf16 MXU operands with f32 accumulation -> slightly looser tolerance vs f32 ref.
    assert jnp.allclose(out, ref, atol=2e-2, rtol=2e-2), f"mismatch vs reference (max abs err {max_err})"

    print("KERNEL_OK")
</pallas_src>

<mosaic_0001>
module attributes {stable_mosaic.version = 11 : i64} {
  func.func @_final_layer_kernel(%arg0: i32, %arg1: i32, %arg2: memref<1x256x128xf32, #tpu.memory_space<vmem>>, %arg3: memref<1x1x128xf32, #tpu.memory_space<vmem>>, %arg4: memref<128x256xbf16, #tpu.memory_space<vmem>>, %arg5: memref<1x256xf32, #tpu.memory_space<vmem>>, %arg6: memref<128x128xbf16, #tpu.memory_space<vmem>>, %arg7: memref<1x128xf32, #tpu.memory_space<vmem>>, %arg8: memref<1x256x128xf32, #tpu.memory_space<vmem>>, %arg9: memref<1x256xf32, #tpu.memory_space<vmem>>) attributes {dimension_semantics = [#tpu.dimension_semantics<parallel>, #tpu.dimension_semantics<arbitrary>], iteration_bounds = array<i64: 2, 2>, scalar_prefetch = 0 : i64, scratch_operands = 1 : i64, tpu.core_type = #tpu.core_type<tc>, window_params = [{transform_indices = @transform_0, window_bounds = array<i64: 1, 256, 128>}, {transform_indices = @transform_1, window_bounds = array<i64: 1, 1, 128>}, {pipeline_mode = #tpu.pipeline_mode<synchronous>, transform_indices = @transform_2, window_bounds = array<i64: 128, 256>}, {pipeline_mode = #tpu.pipeline_mode<synchronous>, transform_indices = @transform_3, window_bounds = array<i64: 1, 256>}, {pipeline_mode = #tpu.pipeline_mode<synchronous>, transform_indices = @transform_4, window_bounds = array<i64: 128, 128>}, {pipeline_mode = #tpu.pipeline_mode<synchronous>, transform_indices = @transform_5, window_bounds = array<i64: 1, 128>}, {transform_indices = @transform_6, window_bounds = array<i64: 1, 256, 128>}]} {
    %c0_i32 = arith.constant 0 : i32
    %0 = arith.cmpi eq, %arg1, %c0_i32 : i32
    %1 = arith.extui %0 : i1 to i32
    %c0_i32_0 = arith.constant 0 : i32
    %2 = arith.cmpi ne, %1, %c0_i32_0 : i32
    scf.if %2 {
      %c0_19 = arith.constant 0 : index
      %c0_20 = arith.constant 0 : index
      %c0_21 = arith.constant 0 : index
      %40 = vector.load %arg3[%c0_19, %c0_20, %c0_21] : memref<1x1x128xf32, #tpu.memory_space<vmem>>, vector<1x1x128xf32>
      %41 = vector.shape_cast %40 : vector<1x1x128xf32> to vector<1x128xf32>
      %42 = arith.negf %41 : vector<1x128xf32>
      %43 = math.exp %42 : vector<1x128xf32>
      %cst_22 = arith.constant 1.000000e+00 : f32
      %44 = vector.broadcast %cst_22 : f32 to vector<1x128xf32>
      %45 = arith.addf %44, %43 : vector<1x128xf32>
      %46 = arith.divf %44, %45 : vector<1x128xf32>
      %47 = arith.mulf %41, %46 : vector<1x128xf32>
      %48 = arith.truncf %47 : vector<1x128xf32> to vector<1x128xbf16>
      %c0_23 = arith.constant 0 : index
      %c0_24 = arith.constant 0 : index
      %49 = vector.load %arg4[%c0_23, %c0_24] : memref<128x256xbf16, #tpu.memory_space<vmem>>, vector<128x256xbf16>
      %cst_25 = arith.constant dense<0.000000e+00> : vector<1x256xf32>
      %50 = tpu.matmul %48, %49, %cst_25 {dimension_numbers = #tpu.dot_dimension_numbers<[1], [0], [0], [1], [0, 0, 1, 1], [], []>} : vector<1x128xbf16>, vector<128x256xbf16>, vector<1x256xf32> -> vector<1x256xf32>
      %c0_26 = arith.constant 0 : index
      %c0_27 = arith.constant 0 : index
      %51 = vector.load %arg5[%c0_26, %c0_27] : memref<1x256xf32, #tpu.memory_space<vmem>>, vector<1x256xf32>
      %52 = arith.addf %50, %51 : vector<1x256xf32>
      %c0_28 = arith.constant 0 : index
      %c0_29 = arith.constant 0 : index
      %53 = vector.load %arg9[%c0_28, %c0_29] : memref<1x256xf32, #tpu.memory_space<vmem>>, vector<1x256xf32>
      tpu.vector_store %arg9[%c0_28, %c0_29], %52 {strides = array<i32>} : memref<1x256xf32, #tpu.memory_space<vmem>>, vector<1x256xf32>,
    } else {
    }
    %c0 = arith.constant 0 : index
    %c0_1 = arith.constant 0 : index
    %3 = vector.load %arg9[%c0, %c0_1] : memref<1x256xf32, #tpu.memory_space<vmem>>, vector<1x128xf32>
    %c0_2 = arith.constant 0 : index
    %c128 = arith.constant 128 : index
    %4 = vector.load %arg9[%c0_2, %c128] : memref<1x256xf32, #tpu.memory_space<vmem>>, vector<1x128xf32>
    %c0_3 = arith.constant 0 : index
    %c0_4 = arith.constant 0 : index
    %c0_5 = arith.constant 0 : index
    %5 = vector.load %arg2[%c0_3, %c0_4, %c0_5] : memref<1x256x128xf32, #tpu.memory_space<vmem>>, vector<1x256x128xf32>
    %6 = vector.shape_cast %5 : vector<1x256x128xf32> to vector<256x128xf32>
    %cst = arith.constant dense<0.000000e+00> : vector<256xf32>
    %7 = vector.multi_reduction <add>, %6, %cst [1] : vector<256x128xf32> to vector<256xf32>
    %8 = vector.shape_cast %7 : vector<256xf32> to vector<256x1xf32>
    %9 = arith.mulf %6, %6 : vector<256x128xf32>
    %cst_6 = arith.constant dense<0.000000e+00> : vector<256xf32>
    %10 = vector.multi_reduction <add>, %9, %cst_6 [1] : vector<256x128xf32> to vector<256xf32>
    %11 = vector.shape_cast %10 : vector<256xf32> to vector<256x1xf32>
    %cst_7 = arith.constant 7.812500e-03 : f32
    %12 = vector.broadcast %cst_7 : f32 to vector<256x1xf32>
    %13 = arith.mulf %8, %12 : vector<256x1xf32>
    %cst_8 = arith.constant 7.812500e-03 : f32
    %14 = vector.broadcast %cst_8 : f32 to vector<256x1xf32>
    %15 = arith.mulf %11, %14 : vector<256x1xf32>
    %16 = arith.mulf %13, %13 : vector<256x1xf32>
    %17 = arith.subf %15, %16 : vector<256x1xf32>
    %18 = vector.broadcast %13 : vector<256x1xf32> to vector<256x128xf32>
    %19 = arith.subf %6, %18 : vector<256x128xf32>
    %cst_9 = arith.constant 9.99999997E-7 : f32
    %20 = vector.broadcast %cst_9 : f32 to vector<256x1xf32>
    %21 = arith.addf %17, %20 : vector<256x1xf32>
    %22 = math.rsqrt %21 : vector<256x1xf32>
    %23 = vector.broadcast %22 : vector<256x1xf32> to vector<256x128xf32>
    %24 = arith.mulf %19, %23 : vector<256x128xf32>
    %cst_10 = arith.constant 1.000000e+00 : f32
    %25 = vector.broadcast %cst_10 : f32 to vector<1x128xf32>
    %26 = arith.addf %4, %25 : vector<1x128xf32>
    %27 = vector.broadcast %26 : vector<1x128xf32> to vector<256x128xf32>
    %28 = arith.mulf %24, %27 : vector<256x128xf32>
    %29 = vector.broadcast %3 : vector<1x128xf32> to vector<256x128xf32>
    %30 = arith.addf %28, %29 : vector<256x128xf32>
    %31 = arith.truncf %30 : vector<256x128xf32> to vector<256x128xbf16>
    %c0_11 = arith.constant 0 : index
    %c0_12 = arith.constant 0 : index
    %32 = vector.load %arg6[%c0_11, %c0_12] : memref<128x128xbf16, #tpu.memory_space<vmem>>, vector<128x128xbf16>
    %cst_13 = arith.constant dense<0.000000e+00> : vector<256x128xf32>
    %33 = tpu.matmul %31, %32, %cst_13 {dimension_numbers = #tpu.dot_dimension_numbers<[1], [0], [0], [1], [0, 0, 1, 1], [], []>} : vector<256x128xbf16>, vector<128x128xbf16>, vector<256x128xf32> -> vector<256x128xf32>
    %c0_14 = arith.constant 0 : index
    %c0_15 = arith.constant 0 : index
    %34 = vector.load %arg7[%c0_14, %c0_15] : memref<1x128xf32, #tpu.memory_space<vmem>>, vector<1x128xf32>
    %35 = vector.broadcast %34 : vector<1x128xf32> to vector<256x128xf32>
    %36 = arith.addf %33, %35 : vector<256x128xf32>
    %c0_16 = arith.constant 0 : index
    %c0_17 = arith.constant 0 : index
    %c0_18 = arith.constant 0 : index
    %37 = vector.load %arg8[%c0_16, %c0_17, %c0_18] : memref<1x256x128xf32, #tpu.memory_space<vmem>>, vector<1x256x128xf32>
    %38 = vector.shape_cast %37 : vector<1x256x128xf32> to vector<256x128xf32>
    %39 = vector.shape_cast %36 : vector<256x128xf32> to vector<1x256x128xf32>
    tpu.vector_store %arg8[%c0_16, %c0_17, %c0_18], %39 {strides = array<i32>} : memref<1x256x128xf32, #tpu.memory_space<vmem>>, vector<1x256x128xf32>,
    return
  }
  func.func @transform_0(%arg0: i32, %arg1: i32) -> (i32, i32, i32) {
    %c0_i32 = arith.constant 0 : i32
    %c0_i32_0 = arith.constant 0 : i32
    return %arg0, %arg1, %c0_i32 : i32, i32, i32
  }
  func.func @transform_1(%arg0: i32, %arg1: i32) -> (i32, i32, i32) {
    %c0_i32 = arith.constant 0 : i32
    %c0_i32_0 = arith.constant 0 : i32
    %c0_i32_1 = arith.constant 0 : i32
    return %arg0, %c0_i32, %c0_i32_0 : i32, i32, i32
  }
  func.func @transform_2(%arg0: i32, %arg1: i32) -> (i32, i32) {
    %c0_i32 = arith.constant 0 : i32
    %c0_i32_0 = arith.constant 0 : i32
    %c0_i32_1 = arith.constant 0 : i32
    return %c0_i32, %c0_i32_0 : i32, i32
  }
  func.func @transform_3(%arg0: i32, %arg1: i32) -> (i32, i32) {
    %c0_i32 = arith.constant 0 : i32
    %c0_i32_0 = arith.constant 0 : i32
    %c0_i32_1 = arith.constant 0 : i32
    return %c0_i32, %c0_i32_0 : i32, i32
  }
  func.func @transform_4(%arg0: i32, %arg1: i32) -> (i32, i32) {
    %c0_i32 = arith.constant 0 : i32
    %c0_i32_0 = arith.constant 0 : i32
    %c0_i32_1 = arith.constant 0 : i32
    return %c0_i32, %c0_i32_0 : i32, i32
  }
  func.func @transform_5(%arg0: i32, %arg1: i32) -> (i32, i32) {
    %c0_i32 = arith.constant 0 : i32
    %c0_i32_0 = arith.constant 0 : i32
    %c0_i32_1 = arith.constant 0 : i32
    return %c0_i32, %c0_i32_0 : i32, i32
  }
  func.func @transform_6(%arg0: i32, %arg1: i32) -> (i32, i32, i32) {
    %c0_i32 = arith.constant 0 : i32
    %c0_i32_0 = arith.constant 0 : i32
    return %arg0, %arg1, %c0_i32 : i32, i32, i32
  }
}

</mosaic_0001>

<bundles_post_ra>
// kernel: tpu_custom_call.1
= control target key start
LH: loop header
LB: loop body
LE: loop exit
PB: predicated region body
PF: predicated region fallthrough
CT: control target
= control target key end

     0   :  { %s2858_s0 = inlined_call_operand.hbm [shape: f32[2,512,128], index: 0, kind: input, shape index: {}]   ;;  %s2859_s1 = inlined_call_operand.vmem [shape: f32[2,1,128], index: 1, kind: input, shape index: {}]   ;;  %s2860_s2 = inlined_call_operand.hbm [shape: bf16[128,256], index: 2, kind: input, shape index: {}]   ;;  %s2861_s3 = inlined_call_operand.vmem [shape: f32[1,256], index: 3, kind: input, shape index: {}]   ;;  %s2862_s4 = inlined_call_operand.hbm [shape: bf16[128,128], index: 4, kind: input, shape index: {}]   ;;  %s2863_s5 = inlined_call_operand.vmem [shape: f32[1,128], index: 5, kind: input, shape index: {}]   ;;  %s2864_s6 = inlined_call_operand.hbm [shape: f32[2,512,128], index: 6, kind: output, shape index: {}]  }
   0x1   :  { %2877 = sst [smem:[#allocation17_spill]] %s2860_s2 }
   0x2   :  { %2878 = sst [smem:[#allocation18_spill]] %s2862_s4 }
   0x3   :  { %2879 = sst [smem:[#allocation19_spill]] %s2863_s5 }
   0x4   :  { %2880 = sst [smem:[#allocation20_spill]] %s2864_s6 }
   0x5   :  { %11 = vsyncpa [#allocation4], 0 }
   0x6   :  { %13 = vsyncpa [#allocation4 + $0x1], 0 }
   0x7   :  { %14 = vsyncpa [#allocation7], 0 }
   0x8   :  { %15 = vsyncpa [#allocation5], 0 }
   0x9   :  { %17 = vsyncpa [#allocation5 + $0x1], 0  ;;  %s2041_s21 = smov 0   ;;  %s2043_s22 = smov 0  }
   0xa   :  { %s2045_s23 = smov 0   ;;  %s2047_s24 = smov 0  }
   0xb   :  { %s2049_s25 = smov 0   ;;  %s2051_s26 = smov 0  }
   0xc   :  { %s2053_s27 = smov 0   ;;  %s2055_s28 = smov 0  }
   0xd LB: > { %2881 = sst [smem:[#allocation13_spill]] %s1964_s21  ;;  %s1460_s29 = sadd.s32 4294967295, %s1992_s28   ;;  %s1992_s28 = sphi %s2055_s28, %s23_s28   ;;  %s1988_s27 = sphi %s2053_s27, %s2915_s27   ;;  %s1984_s26 = sphi %s2051_s26, %s2914_s26   ;;  %s1980_s25 = sphi %s2049_s25, %s2913_s25   ;;  %s1976_s24 = sphi %s2047_s24, %s2912_s24   ;;  %s1972_s23 = sphi %s2045_s23, %s2911_s23   ;;  %s1968_s22 = sphi %s2043_s22, %s2910_s22   ;;  %s1964_s21 = sphi %s2041_s21, %s2909_s21  }
   0xe   : > { %s1461_s30 = sadd.s32 4294967294, %s1992_s28   ;;  %p57_p0 = scmp.ne.s32.totalorder %s1968_s22, %s1964_s21 }
   0xf   : > { %p2085_p1 = scmp.eq.s32.totalorder %s1460_s29, 0  ;;  %p2089_p2 = scmp.eq.s32.totalorder %s1460_s29, 3 }
  0x10   : > { %p199_p3 = scmp.eq.s32.totalorder %s1461_s30, 3  ;;  %p1462_p5 = scmp.ge.s32.totalorder %s1992_s28, 1 }
  0x11   : > { %s2882_s7 = scalar_select %p2085_p1, 1, 0 }
  0x12   : > { %s2883_s8 = scalar_select %p2089_p2, 1, 0 }
  0x13   : > { %p2095_p4 = por %p2085_p1, %p57_p0  ;;  %p2100_p6 = por %p199_p3, %p57_p0 }
  0x14   : > { %p206_p7 = scmp.lt.s32.totalorder %s1992_s28, 5  ;;  %s1994_s12 = smov [#allocation6]  }
  0x15   : > { %s2884_s9 = scalar_select %p2095_p4, 1, 0 }
  0x16   : > { %s2885_s10 = scalar_select %p2100_p6, 1, 0 }
  0x17   : > { %p2105_p8 = pnand %p1462_p5, %p206_p7  ;;  %s218_s13 = sshll.u32 %s1994_s12, 4  ;;  %s219_s13 = int_to_ptr.vmem [resolvable:$true] %s218_s13 }
  0x18   : > { %2886 = sst [smem:[#allocation14_spill]] %s2885_s10  ;;  %s1995_s15 = smov [#allocation8]  }
  0x19   : > { %s2887_s11 = scalar_select %p2105_p8, 1, 0 }
  0x1a   : > { %p1609_p9 = pneg %p2105_p8  ;;  %s234_s16 = sshll.u32 %s1995_s15, 4  ;;  %s2117_s16 = int_to_ptr.vmem [resolvable:$true] %s234_s16 }
  0x1b   : > { %s2889_s2 = sld [smem:[#allocation17_spill]] }
  0x1c   : > { %p2113_p10 = pnand %p1609_p9, %p2085_p1 }
  0x1e   : > { %p1806_p12 = pneg %p2113_p10 }
  0x21   : > { %s1804_s19 = scalar_lea.hbm %s2889_s2, 2048 }
  0x22   : > { %p1805_p11 = scmp.ne.s32.totalorder %s2889_s2, %s1804_s19  ;;  %p1811_p3 = scmp.lt.u32.totalorder %s1804_s19, %s2889_s2 }
  0x24   : > { %p1807_p13 = pnand %p1806_p12, %p1805_p11 }
  0x26   : > { %p1808_p0 = pneg %p1807_p13 }
  0x28   : > { %p1813_p5 = pnand %p1811_p3, %p1808_p0 }
  0x2a   : > { %1816 = shalt.err (!%p1813_p5)
}
  0x2b   : > { %s1817_s15 = scalar_lea.vmem %s219_s13, 2048  ;;  %p1825_p1 = scmp.lt.s32.totalorder %s219_s13, %s219_s13 }
  0x2c   : > { %p1818_p7 = scmp.ne.s32.totalorder %s219_s13, %s1817_s15  ;;  %p1826_p4 = scmp.lt.s32.totalorder %s1817_s15, %s1817_s15 }
  0x2e   : > { %p1820_p9 = pnand %p1818_p7, %p1806_p12  ;;  %p1827_p8 = por %p1826_p4, %p1825_p1 }
  0x30   : > { %p1821_p6 = pneg %p1820_p9 }
  0x32   : > { %p1828_p2 = pnand %p1827_p8, %p1821_p6 }
  0x34   : > { %1831 = shalt.err (!%p1828_p2)
}
  0x35   : > { %s2872_s17 = smov 128   ;;  %s2873_s18 = smov 8  }
  0x36   : > { %1612 = dma.hbm_to_vmem [thread:$0]  (!%p2113_p10), %s2889_s2, 2048, %s219_s13, [#allocation7], %s2872_s17, %s2872_s17, %s2873_s18  }
  0x37   : > { %s2890_s4 = sld [smem:[#allocation18_spill]] }
  0x3d   : > { %s1832_s12 = scalar_lea.hbm %s2890_s4, 1024 }
  0x3e   : > { %p1833_p1 = scmp.ne.s32.totalorder %s2890_s4, %s1832_s12  ;;  %p1839_p6 = scmp.lt.u32.totalorder %s1832_s12, %s2890_s4 }
  0x40   : > { %p1835_p2 = pnand %p1833_p1, %p1806_p12 }
  0x42   : > { %p1836_p4 = pneg %p1835_p2 }
  0x44   : > { %p1841_p8 = pnand %p1839_p6, %p1836_p4 }
  0x46   : > { %1844 = shalt.err (!%p1841_p8)
}
  0x47   : > { %s1845_s13 = scalar_lea.vmem %s2117_s16, 1024  ;;  %p1853_p3 = scmp.lt.s32.totalorder %s2117_s16, %s2117_s16 }
  0x48   : > { %p1846_p11 = scmp.ne.s32.totalorder %s2117_s16, %s1845_s13  ;;  %p1854_p5 = scmp.lt.s32.totalorder %s1845_s13, %s1845_s13 }
  0x4a   : > { %p1848_p13 = pnand %p1846_p11, %p1806_p12  ;;  %p1855_p7 = por %p1854_p5, %p1853_p3 }
  0x4c   : > { %p1849_p0 = pneg %p1848_p13 }
  0x4e   : > { %p1856_p9 = pnand %p1855_p7, %p1849_p0 }
  0x50   : > { %1859 = shalt.err (!%p1856_p9)
}
  0x51   : > { %s1998_s6 = smov 64   ;;  %s1999_s21 = smov 4  }
  0x52   : > { %1615 = dma.hbm_to_vmem [thread:$0]  (!%p2113_p10), %s2890_s4, 1024, %s2117_s16, [#allocation7], %s1998_s6, %s1998_s6, %s1999_s21  }
  0x53   : > { %s32_s20 = sadd.s32 1, %s1984_s26  ;;  %s35_s29 = sadd.s32 1, %s1988_s27 }
  0x54   : > { %p33_p12 = scmp.ge.s32.totalorder %s32_s20, 2  ;;  %s44_s30 = sadd.s32 1, %s1972_s23 }
  0x55   : > { %p51_p1 = scmp.ne.s32.totalorder %s1972_s23, %s1968_s22  ;;  %p52_p2 = scmp.eq.s32.totalorder %s1992_s28, 0 }
  0x56   : > { %s2917_s20 = smov (%p33_p12, %s32_s20), 0  ;;  %s2919_s29 = smov (!%p33_p12, %s35_s29), %s1988_s27 }
  0x57   : > { %2891 = sst [smem:[#allocation15_spill]] %s2917_s20  ;;  %s40_s12 = ssub.s32 %s1984_s26, %s2917_s20 }
  0x58   : > { %p2180_p4 = por %p52_p2, %p51_p1  ;;  %p37_p10 = scmp.ge.s32.totalorder %s2919_s29, 2 }
  0x59   : > { %p2893_p6 = scmp.ne.s32.totalorder %s2883_s8, 0  ;;  %p1626_p11 = scmp.lt.s32.totalorder %s1992_s28, 4 }
  0x5a   : > { %s251_s15 = sand.u32 1, %s1972_s23   ;;  %s2921_s29 = smov (%p37_p10, %s2919_s29), 0 }
  0x5b   : > { %p2186_p8 = por %p2893_p6, %p51_p1  ;;  %s1466_s13 = sshll.u32 %s251_s15, 8 }
  0x5c   : > { %s39_s6 = ssub.s32 %s1988_s27, %s2921_s29  ;;  %s1467_s10 = sshll.u32 %s1984_s26, 5 }
  0x5d   : > { %s2894_s16 = scalar_select %p2186_p8, 1, 0 }
  0x5e   : > { %s41_s21 = sor.u32 %s40_s12, %s39_s6  ;;  %s1468_s19 = sshll.u32 %s1988_s27, 6 }
  0x5f   : > { %2895 = sst [smem:[#allocation16_spill]] %s2894_s16  ;;  %p42_p13 = scmp.eq.s32.totalorder %s41_s21, 0 }
  0x60   : > { %s261_s17 = sadd.s32 %s1468_s19, %s1467_s10  ;;  %s255_s18 = scalar_lea.vmem [#allocation3], %s1466_s13 }
  0x61   : > { %s264_s8 = sshll.u32 %s255_s18, 4  ;;  %s1469_s4 = sshll.u32 %s261_s17, 7  ;;  %s2201_s8 = int_to_ptr.vmem [resolvable:$true] %s264_s8 }
  0x62   : > { %s2199_s2 = scalar_select %p42_p13, %s1972_s23, %s44_s30  }
  0x63   : > { %s2206_s5 = scalar_lea.hbm %s2858_s0, %s1469_s4  ;;  %p2212_p0 = pnand %p1626_p11, %p2180_p4 }
  0x64   : > { %s2216_s17 = scalar_lea.sflag [#allocation4], %s251_s15  ;;  %s1860_s18 = scalar_lea.hbm %s2206_s5, 4096 }
  0x65   : > { %p1861_p3 = scmp.ne.s32.totalorder %s2206_s5, %s1860_s18  ;;  %p1862_p5 = pneg %p2212_p0 }
  0x66   : > { %s1865_s30 = scalar_lea.hbm %s2858_s0, 16384  ;;  %p1866_p12 = scmp.lt.u32.totalorder %s2206_s5, %s2858_s0 }
  0x67   : > { %p1863_p7 = pnand %p1862_p5, %p1861_p3  ;;  %p1867_p1 = scmp.lt.u32.totalorder %s1865_s30, %s1860_s18 }
  0x68   : > { %p1869_p4 = scmp.lt.u32.totalorder %s1860_s18, %s2206_s5 }
  0x69   : > { %p1864_p9 = pneg %p1863_p7  ;;  %p1868_p2 = por %p1867_p1, %p1866_p12 }
  0x6b   : > { %p1870_p10 = por %p1869_p4, %p1868_p2 }
  0x6d   : > { %p1871_p6 = pnand %p1870_p10, %p1864_p9 }
  0x6f   : > { %1874 = shalt.err (!%p1871_p6)
}
  0x70   : > { %s1875_s15 = scalar_lea.vmem %s2201_s8, 4096  ;;  %s2000_s13 = smov [#allocation3]  }
  0x71   : > { %p1876_p11 = scmp.ne.s32.totalorder %s2201_s8, %s1875_s15  ;;  %s1880_s6 = sshll.u32 %s2000_s13, 4  ;;  %s1881_s6 = int_to_ptr.vmem [resolvable:$false] %s1880_s6 }
  0x72   : > { %s1882_s21 = scalar_lea.vmem %s1881_s6, 8192  ;;  %p1883_p7 = scmp.lt.s32.totalorder %s2201_s8, %s1881_s6 }
  0x73   : > { %p1878_p13 = pnand %p1876_p11, %p1862_p5  ;;  %p1884_p12 = scmp.lt.s32.totalorder %s1882_s21, %s1875_s15 }
  0x75   : > { %p1879_p3 = pneg %p1878_p13  ;;  %p1885_p1 = por %p1884_p12, %p1883_p7 }
  0x77   : > { %p1886_p2 = pnand %p1885_p1, %p1879_p3 }
  0x79   : > { %1889 = shalt.err (!%p1886_p2)
}
  0x7a   : > { %s2897_s10 = smov 8   ;;  %s2898_s19 = smov 128  }
  0x7b   : > { %1619 = dma.hbm_to_vmem [thread:$0]  (!%p2212_p0), %s2206_s5, 4096, %s2201_s8, %s2216_s17, %s2898_s19, %s2898_s19, %s2897_s10  }
  0x7c   : > { %p2899_p5 = scmp.ne.s32.totalorder %s2887_s11, 0 }
  0x7d   : > { %s2250_s18 = sand.u32 (!%p2899_p5), 1, %s1968_s22   ;;  %p2900_p9 = scmp.ne.s32.totalorder (!%p2899_p5), %s2884_s9, 0 }
  0x7e   : > { %282 = sbr.rel (%p2899_p5) target bundleno = 921 (0x399), region = 44  ;;  %s1471_s4 = sshll.u32 (!%p2899_p5), %s2250_s18, 8 }
  0x7f   : > { %s285_s20 = scalar_lea.sflag (!%p2899_p5), [#allocation4], %s2250_s18  ;;  %s2254_s30 = scalar_lea.vmem (!%p2899_p5), [#allocation3], %s1471_s4 }
  0x85   : > { %1951 = dma.done.wait (%p2900_p9), %s285_s20, 4096  }
  0x86   : > { %1953 = vsyncadd (%p2900_p9), %s285_s20, 4294963200  ;;  %p2901_p0 = scmp.ne.s32.totalorder %s2882_s7, 0 }
  0x88   : > { %1955 = dma.done.wait (%p2901_p0), [#allocation7], 3072  }
  0x89   : > { %1957 = vsyncadd (%p2901_p0), [#allocation7], 4294964224  ;;  %p329_p4 = scmp.lt.s32.totalorder %s1980_s25, 1  ;;  %s2269_s17 = scalar_lea.vmem [#allocation9], %s1471_s4 }
  0x8a   : > { %p1475_p10 = scmp.ne.s32.totalorder %s1976_s24, 0 }
  0x8b   : > { %s330_s5 = scalar_select %p329_p4, %s1980_s25, 1 }
  0x8c   : > { %337 = sbr.rel (%p1475_p10) target bundleno = 396 (0x18c), region = 60  ;;  %v1704_v0 = vld [vmem:[#allocation6 + $0x4] ss:$8 sps:$4 sm:$0xff] (!%p1475_p10)   ;;  %v1706_v1 = vld [vmem:[#allocation6] ss:$8 sps:$4 sm:$0xff] (!%p1475_p10)   ;;  %v2001_v2 = vmov (!%p1475_p10), 0   ;;  %v445_v24 = vlaneseq (!%p1475_p10) }
  0x8d   : > { %s331_s12 = scalar_lea.vmem %s2859_s1, %s330_s5  ;;  %487 = vmatprep.mubr.bf16.mxu0 (!%p1475_p10), %v2001_v2  ;;  %455 = vmatprep.subr.bf16.mxu0 (!%p1475_p10), %v1704_v0  ;;  %v1707_v3 = vld [vmem:[#allocation6 + $0x14] ss:$8 sps:$4 sm:$0xff] (!%p1475_p10)   ;;  %v1709_v4 = vld [vmem:[#allocation6 + $0x10] ss:$8 sps:$4 sm:$0xff] (!%p1475_p10)   ;;  %v1710_v5 = vld [vmem:[#allocation6 + $0x24] ss:$8 sps:$4 sm:$0xff] (!%p1475_p10)  }
  0x8e   : > { %456 = vmatpush1.bf16.msra.mxu0 (!%p1475_p10), %v1706_v1  ;;  %v1712_v6 = vld [vmem:[#allocation6 + $0x20] ss:$8 sps:$4 sm:$0xff] (!%p1475_p10)   ;;  %v1713_v7 = vld [vmem:[#allocation6 + $0x34] ss:$8 sps:$4 sm:$0xff] (!%p1475_p10)   ;;  %v1715_v9 = vld [vmem:[#allocation6 + $0x30] ss:$8 sps:$4 sm:$0xff] (!%p1475_p10)  }
  0x8f   : > { %457 = vmatprep.subr.bf16.mxu0 (!%p1475_p10), %v1707_v3  ;;  %v338_v8 = vld [vmem:[%s331_s12] sm:$0x1] (!%p1475_p10)  ;;  %v1716_v11 = vld [vmem:[#allocation6 + $0x44] ss:$8 sps:$4 sm:$0xff] (!%p1475_p10)   ;;  %v1718_v12 = vld [vmem:[#allocation6 + $0x40] ss:$8 sps:$4 sm:$0xff] (!%p1475_p10)  }
  0x90   : > { %v1476_v10 = vmul.f32 (!%p1475_p10), -1.442695, %v338_v8  ;;  %v1719_v13 = vld [vmem:[#allocation6 + $0x54] ss:$8 sps:$4 sm:$0xff] (!%p1475_p10)   ;;  %v1721_v14 = vld [vmem:[#allocation6 + $0x50] ss:$8 sps:$4 sm:$0xff] (!%p1475_p10)  }
  0x91   : > { %v1722_v15 = vld [vmem:[#allocation6 + $0x64] ss:$8 sps:$4 sm:$0xff] (!%p1475_p10)   ;;  %v1724_v17 = vld [vmem:[#allocation6 + $0x60] ss:$8 sps:$4 sm:$0xff] (!%p1475_p10)   ;;  %v1725_v18 = vld [vmem:[#allocation6 + $0x74] ss:$8 sps:$4 sm:$0xff] (!%p1475_p10)  }
  0x92   : > { %458 = vmatpush1.bf16.msra.mxu0 (!%p1475_p10), %v1709_v4  ;;  %1728 = vpow2.f32 (!%p1475_p10), %v1476_v10  ;;  %v1727_v20 = vld [vmem:[#allocation6 + $0x70] ss:$8 sps:$4 sm:$0xff] (!%p1475_p10)   ;;  %v446_v25 = vshrl.u32 (!%p1475_p10), %v445_v24, 7  ;;  %v363_v27 = vld [vmem:[%s2861_s3] sm:$0x3] (!%p1475_p10)  ;;  %vm516_vm0 = vcmp.lt.s32.totalorder (!%p1475_p10), %v445_v24, 256 }
  0x93   : > { %459 = vmatprep.subr.bf16.mxu0 %v1710_v5  ;;  %v2002_v29 = vmov 1966171168  }
  0x94   : > { %v447_v26 = vsub.s32 0, %v446_v25  ;;  %v451_v28 = vsub.s32 1, %v446_v25  ;;  %v500_v30 = vunpack.c.l.s4 %v2002_v29 }
  0x96   : > { %460 = vmatpush1.bf16.msra.mxu0 %v1712_v6  ;;  %v448_v31 = vrot.slane %v363_v27, %v447_v26  ;;  %v452_v32 = vrot.slane %v363_v27, %v451_v28  ;;  %v501_v33 = vunpack.c.0.s8 %v500_v30 }
  0x97   : > { %461 = vmatprep.subr.bf16.mxu0 %v1713_v7 }
  0x98   : > { %v504_v38 = vsub.s32 %v501_v33, %v446_v25 }
  0x9a   : > { %462 = vmatpush1.bf16.msra.mxu0 %v1715_v9 }
  0x9b   : > { %463 = vmatprep.subr.bf16.mxu0 %v1716_v11 }
  0x9c   : > { %v1729_v16 = vpop.eup %1728 }
  0x9d   : > { %v342_v19 = vadd.f32 1.0, %v1729_v16 }
  0x9e   : > { %464 = vmatpush1.bf16.msra.mxu0 %v1718_v12 }
  0x9f   : > { %465 = vmatprep.subr.bf16.mxu0 %v1719_v13  ;;  %1730 = vrcp.f32 %v342_v19 }
  0xa2   : > { %466 = vmatpush1.bf16.msra.mxu0 %v1721_v14 }
  0xa3   : > { %467 = vmatprep.subr.bf16.mxu0 %v1722_v15 }
  0xa6   : > { %468 = vmatpush1.bf16.msra.mxu0 %v1724_v17 }
  0xa7   : > { %469 = vmatprep.subr.bf16.mxu0 %v1725_v18 }
  0xa9   : > { %v1731_v21 = vpop.eup %1730 }
  0xaa   : > { %470 = vmatpush1.bf16.msra.mxu0 %v1727_v20  ;;  %v345_v22 = vmul.f32 %v1731_v21, %v338_v8 }
  0xac   : > { %v346_v23 = vpack.c.bf16 %v345_v22, %v345_v22 }
  0xae   : > { %488 = vmatmul.mubr.bf16.vlgmr.msra.gmra.mrb[0].mxu0 %v346_v23 }
 0x181   : > { %v489_v34 = vpop.f32.mrb[0].mxu0 }
 0x182   : > { %v490_v35 = vadd.f32 %v489_v34, %v448_v31  ;;  %v491_v36 = vpop.f32.mrb[1].mxu0 }
 0x183   : > { %v492_v37 = vadd.f32 %v491_v36, %v452_v32  ;;  %v493_v39 = vpop.f32.mrb[2].mxu0 }
 0x184   : > { %v494_v40 = vpop.f32.mrb[3].mxu0 }
 0x185   : > { %v498_v41 = vcombine.low %v490_v35, %v492_v37 }
 0x187   : > { %v505_v42 = vrot.slane %v498_v41, %v504_v38 }
 0x189   : > { %v512_v43 = vrot.slane %v505_v42, %v504_v38 }
 0x18b   : > { %518 = vst.msk [vmem:[#allocation2] sm:$0x3] %vm516_vm0, %v512_v43 }
 0x18c PF: > { %v2276_v44 = vld [vmem:[%s2254_s30 + $0x80] sm:$0xff]  ;;  %v2284_v46 = vld [vmem:[%s2254_s30 + $0x88] sm:$0xff]  ;;  %v2292_v48 = vld [vmem:[%s2254_s30 + $0x18] sm:$0xff]  ;;  %s2902_s15 = sld [smem:[#allocation19_spill]]  ;;  %s1504_s13 = sshll.u32 %s1976_s24, 5 }
 0x18d   : > { %v2279_v45 = vld [vmem:[%s2254_s30] sm:$0xff]  ;;  %585 = vadd.xlane.f32.xlu1 %v2276_v44  ;;  %v2287_v47 = vld [vmem:[%s2254_s30 + $0x8] sm:$0xff]  ;;  %v2295_v49 = vld [vmem:[%s2254_s30 + $0x10] sm:$0xff]  ;;  %v634_v54 = vmul.f32 %v2284_v46, %v2284_v46  ;;  %v633_v55 = vmul.f32 %v2276_v44, %v2276_v44  ;;  %v620_v56 = vmul.f32 %v2292_v48, %v2292_v48  ;;  %s1505_s6 = sshll.u32 %s1980_s25, 6  ;;  %s1342_s25 = sshll.u32 %s2269_s17, 4  ;;  %s2800_s25 = int_to_ptr.vmem [resolvable:$true] %s1342_s25 }
 0x18e   : > { %553 = vadd.xlane.f32.xlu0 %v2279_v45  ;;  %v2300_v50 = vld [vmem:[%s2254_s30 + $0x98] sm:$0xff]  ;;  %v2303_v51 = vld [vmem:[%s2254_s30 + $0x90] sm:$0xff]  ;;  %v618_v52 = vmul.f32 %v2287_v47, %v2287_v47  ;;  %v617_v53 = vmul.f32 %v2279_v45, %v2279_v45  ;;  %v619_v57 = vmul.f32 %v2295_v49, %v2295_v49  ;;  %v2324_v60 = vld [vmem:[%s2254_s30 + $0x28] sm:$0xff]  ;;  %s1339_s21 = sadd.s32 %s1505_s6, %s1504_s13  ;;  %s2904_s20 = sld [smem:[#allocation20_spill]] }
 0x18f   : > { %v636_v58 = vmul.f32 %v2300_v50, %v2300_v50  ;;  %v635_v59 = vmul.f32 %v2303_v51, %v2303_v51  ;;  %v2327_v61 = vld [vmem:[%s2254_s30 + $0x20] sm:$0xff]  ;;  %v2332_v63 = vld [vmem:[%s2254_s30 + $0xa8] sm:$0xff]  ;;  %v2340_v2 = vld [vmem:[%s2254_s30 + $0x38] sm:$0xff]  ;;  %v622_v8 = vmul.f32 %v2324_v60, %v2324_v60  ;;  %s1506_s24 = sshll.u32 %s1339_s21, 7  ;;  %s1327_s5 = scalar_lea.sflag [#allocation5], %s2250_s18 }
 0x190   : > { %v1732_v62 = vld [vmem:[#allocation8] sm:$0xff]   ;;  %v1733_v1 = vld [vmem:[#allocation8 + $0x8] sm:$0xff]   ;;  %v2343_v3 = vld [vmem:[%s2254_s30 + $0x30] sm:$0xff]  ;;  %v621_v9 = vmul.f32 %v2327_v61, %v2327_v61  ;;  %v638_v11 = vmul.f32 %v2332_v63, %v2332_v63  ;;  %v624_v14 = vmul.f32 %v2340_v2, %v2340_v2  ;;  %s1890_s11 = scalar_lea.vmem %s2800_s25, 4096  ;;  %s2003_s8 = smov [#allocation9]  }
 0x191   : > { %587 = vadd.xlane.f32.xlu1 %v2284_v46  ;;  %v2335_v0 = vld [vmem:[%s2254_s30 + $0xa0] sm:$0xff]  ;;  %1533 = vmatprep.subr.bf16.mxu0 %v1732_v62  ;;  %v1734_v4 = vld [vmem:[#allocation8 + $0x10] sm:$0xff]   ;;  %v2348_v5 = vld [vmem:[%s2254_s30 + $0xb8] sm:$0xff]  ;;  %v623_v15 = vmul.f32 %v2343_v3, %v2343_v3  ;;  %p1891_p6 = scmp.ne.s32.totalorder %s2800_s25, %s1890_s11  ;;  %s1894_s12 = sshll.u32 %s2003_s8, 4  ;;  %s1895_s12 = int_to_ptr.vmem [resolvable:$false] %s1894_s12 }
 0x192   : > { %555 = vadd.xlane.f32.xlu0 %v2287_v47  ;;  %1581 = vmatprep.subr.bf16.mxu1 %v1732_v62  ;;  %v2351_v6 = vld [vmem:[%s2254_s30 + $0xb0] sm:$0xff]  ;;  %v1735_v7 = vld [vmem:[#allocation8 + $0x18] sm:$0xff]   ;;  %v1736_v10 = vld [vmem:[#allocation8 + $0x20] sm:$0xff]   ;;  %v637_v12 = vmul.f32 %v2335_v0, %v2335_v0  ;;  %v640_v17 = vmul.f32 %v2348_v5, %v2348_v5  ;;  %s1896_s7 = scalar_lea.vmem %s1895_s12, 8192  ;;  %p1897_p3 = scmp.lt.s32.totalorder %s2800_s25, %s1895_s12 }
 0x193   : > { %1534 = vmatpush3.bf16.msra.mxu0 %v1732_v62  ;;  %1589 = vmatpush3.bf16.msra.mxu1 %v1732_v62  ;;  %v1737_v13 = vld [vmem:[#allocation8 + $0x28] sm:$0xff]   ;;  %v1738_v16 = vld [vmem:[#allocation8 + $0x30] sm:$0xff]   ;;  %v639_v18 = vmul.f32 %v2351_v6, %v2351_v6  ;;  %v1739_v19 = vld [vmem:[#allocation8 + $0x38] sm:$0xff]   ;;  %p1892_p11 = pnand %p1891_p6, %p2186_p8  ;;  %p1898_p7 = scmp.lt.s32.totalorder %s1896_s7, %s1890_s11 }
 0x194   : > { %1535 = vmatprep.subr.bf16.mxu0 %v1733_v1  ;;  %1582 = vmatprep.subr.bf16.mxu1 %v1733_v1  ;;  %v2372_v20 = vld [vmem:[%s2254_s30 + $0x48] sm:$0xff]  ;;  %v2375_v21 = vld [vmem:[%s2254_s30 + $0x40] sm:$0xff]  ;;  %v2388_v24 = vld [vmem:[%s2254_s30 + $0x58] sm:$0xff] }
 0x195   : > { %559 = vadd.xlane.f32.xlu1 %v2292_v48  ;;  %v2380_v22 = vld [vmem:[%s2254_s30 + $0xc8] sm:$0xff]  ;;  %v2383_v23 = vld [vmem:[%s2254_s30 + $0xc0] sm:$0xff]  ;;  %v2391_v25 = vld [vmem:[%s2254_s30 + $0x50] sm:$0xff]  ;;  %v626_v28 = vmul.f32 %v2372_v20, %v2372_v20  ;;  %v625_v29 = vmul.f32 %v2375_v21, %v2375_v21  ;;  %v628_v32 = vmul.f32 %v2388_v24, %v2388_v24  ;;  %p1893_p13 = pneg %p1892_p11  ;;  %p1899_p12 = por %p1898_p7, %p1897_p3 }
 0x196   : > { %557 = vadd.xlane.f32.xlu0 %v2295_v49  ;;  %v2396_v26 = vld [vmem:[%s2254_s30 + $0xd8] sm:$0xff]  ;;  %v2399_v27 = vld [vmem:[%s2254_s30 + $0xd0] sm:$0xff]  ;;  %v642_v30 = vmul.f32 %v2380_v22, %v2380_v22  ;;  %v641_v31 = vmul.f32 %v2383_v23, %v2383_v23  ;;  %v627_v33 = vmul.f32 %v2391_v25, %v2391_v25  ;;  %v2420_v36 = vld [vmem:[%s2254_s30 + $0x68] sm:$0xff] }
 0x197   : > { %1536 = vmatpush3.bf16.msra.mxu0 %v1733_v1  ;;  %1590 = vmatpush3.bf16.msra.mxu1 %v1733_v1  ;;  %v644_v34 = vmul.f32 %v2396_v26, %v2396_v26  ;;  %v643_v35 = vmul.f32 %v2399_v27, %v2399_v27  ;;  %v2423_v37 = vld [vmem:[%s2254_s30 + $0x60] sm:$0xff]  ;;  %v2428_v38 = vld [vmem:[%s2254_s30 + $0xe8] sm:$0xff]  ;;  %v2436_v40 = vld [vmem:[%s2254_s30 + $0x78] sm:$0xff]  ;;  %p1900_p1 = pnand %p1899_p12, %p1893_p13 }
 0x198   : > { %1537 = vmatprep.subr.bf16.mxu0 %v1734_v4  ;;  %1583 = vmatprep.subr.bf16.mxu1 %v1734_v4  ;;  %v2431_v39 = vld [vmem:[%s2254_s30 + $0xe0] sm:$0xff]  ;;  %v2439_v41 = vld [vmem:[%s2254_s30 + $0x70] sm:$0xff]  ;;  %v2444_v42 = vld [vmem:[%s2254_s30 + $0xf8] sm:$0xff] }
 0x199   : > { %591 = vadd.xlane.f32.xlu1 %v2300_v50  ;;  %v2447_v43 = vld [vmem:[%s2254_s30 + $0xf0] sm:$0xff]  ;;  %s2798_s30 = scalar_lea.hbm %s2904_s20, %s1506_s24 }
 0x19a   : > { %589 = vadd.xlane.f32.xlu0 %v2303_v51 }
 0x19b   : > { %1538 = vmatpush3.bf16.msra.mxu0 %v1734_v4  ;;  %1591 = vmatpush3.bf16.msra.mxu1 %v1734_v4 }
 0x19c   : > { %1539 = vmatprep.subr.bf16.mxu0 %v1735_v7  ;;  %1584 = vmatprep.subr.bf16.mxu1 %v1735_v7 }
 0x19d   : > { %651 = vadd.xlane.f32.xlu1 %v618_v52  ;;  %v630_v52 = vmul.f32 %v2420_v36, %v2420_v36 }
 0x19e   : > { %649 = vadd.xlane.f32.xlu0 %v617_v53  ;;  %v629_v53 = vmul.f32 %v2423_v37, %v2423_v37 }
 0x19f   : > { %1540 = vmatpush3.bf16.msra.mxu0 %v1735_v7  ;;  %1592 = vmatpush3.bf16.msra.mxu1 %v1735_v7 }
 0x1a0   : > { %1541 = vmatprep.subr.bf16.mxu0 %v1736_v10  ;;  %1585 = vmatprep.subr.bf16.mxu1 %v1736_v10 }
 0x1a1   : > { %683 = vadd.xlane.f32.xlu1 %v634_v54  ;;  %v646_v54 = vmul.f32 %v2428_v38, %v2428_v38 }
 0x1a2   : > { %681 = vadd.xlane.f32.xlu0 %v633_v55  ;;  %v645_v55 = vmul.f32 %v2431_v39, %v2431_v39 }
 0x1a3   : > { %1542 = vmatpush3.bf16.msra.mxu0 %v1736_v10  ;;  %1593 = vmatpush3.bf16.msra.mxu1 %v1736_v10 }
 0x1a4   : > { %1543 = vmatprep.subr.bf16.mxu0 %v1737_v13  ;;  %1586 = vmatprep.subr.bf16.mxu1 %v1737_v13 }
 0x1a5   : > { %655 = vadd.xlane.f32.xlu1 %v620_v56  ;;  %v632_v56 = vmul.f32 %v2436_v40, %v2436_v40 }
 0x1a6   : > { %653 = vadd.xlane.f32.xlu0 %v619_v57  ;;  %v631_v57 = vmul.f32 %v2439_v41, %v2439_v41 }
 0x1a7   : > { %1544 = vmatpush3.bf16.msra.mxu0 %v1737_v13  ;;  %1594 = vmatpush3.bf16.msra.mxu1 %v1737_v13 }
 0x1a8   : > { %1545 = vmatprep.subr.bf16.mxu0 %v1738_v16  ;;  %1587 = vmatprep.subr.bf16.mxu1 %v1738_v16 }
 0x1a9   : > { %687 = vadd.xlane.f32.xlu1 %v636_v58  ;;  %v648_v58 = vmul.f32 %v2444_v42, %v2444_v42 }
 0x1aa   : > { %685 = vadd.xlane.f32.xlu0 %v635_v59  ;;  %v647_v59 = vmul.f32 %v2447_v43, %v2447_v43 }
 0x1ab   : > { %1546 = vmatpush3.bf16.msra.mxu0 %v1738_v16  ;;  %1595 = vmatpush3.bf16.msra.mxu1 %v1738_v16 }
 0x1ac   : > { %1547 = vmatprep.subr.bf16.mxu0 %v1739_v19  ;;  %1588 = vmatprep.subr.bf16.mxu1 %v1739_v19 }
 0x1ad   : > { %563 = vadd.xlane.f32.xlu1 %v2324_v60 }
 0x1ae   : > { %561 = vadd.xlane.f32.xlu0 %v2327_v61 }
 0x1af   : > { %1548 = vmatpush3.bf16.msra.mxu0 %v1739_v19  ;;  %1596 = vmatpush3.bf16.msra.mxu1 %v1739_v19 }
 0x1b1   : > { %595 = vadd.xlane.f32.xlu1 %v2332_v63 }
 0x1b2   : > { %593 = vadd.xlane.f32.xlu0 %v2335_v0 }
 0x1b5   : > { %567 = vadd.xlane.f32.xlu1 %v2340_v2 }
 0x1b6   : > { %565 = vadd.xlane.f32.xlu0 %v2343_v3 }
 0x1b9   : > { %599 = vadd.xlane.f32.xlu1 %v2348_v5 }
 0x1ba   : > { %597 = vadd.xlane.f32.xlu0 %v2351_v6 }
 0x1bd   : > { %659 = vadd.xlane.f32.xlu1 %v622_v8 }
 0x1be   : > { %657 = vadd.xlane.f32.xlu0 %v621_v9 }
 0x1c1   : > { %691 = vadd.xlane.f32.xlu1 %v638_v11 }
 0x1c2   : > { %689 = vadd.xlane.f32.xlu0 %v637_v12 }
 0x1c5   : > { %663 = vadd.xlane.f32.xlu1 %v624_v14 }
 0x1c6   : > { %661 = vadd.xlane.f32.xlu0 %v623_v15 }
 0x1c9   : > { %695 = vadd.xlane.f32.xlu1 %v640_v17 }
 0x1ca   : > { %693 = vadd.xlane.f32.xlu0 %v639_v18 }
 0x1cd   : > { %571 = vadd.xlane.f32.xlu1 %v2372_v20 }
 0x1ce   : > { %569 = vadd.xlane.f32.xlu0 %v2375_v21 }
 0x1d1   : > { %603 = vadd.xlane.f32.xlu1 %v2380_v22 }
 0x1d2   : > { %601 = vadd.xlane.f32.xlu0 %v2383_v23 }
 0x1d5   : > { %575 = vadd.xlane.f32.xlu1 %v2388_v24 }
 0x1d6   : > { %573 = vadd.xlane.f32.xlu0 %v2391_v25 }
 0x1d9   : > { %607 = vadd.xlane.f32.xlu1 %v2396_v26 }
 0x1da   : > { %605 = vadd.xlane.f32.xlu0 %v2399_v27 }
 0x1dd   : > { %667 = vadd.xlane.f32.xlu1 %v626_v28 }
 0x1de   : > { %665 = vadd.xlane.f32.xlu0 %v625_v29 }
 0x1e1   : > { %699 = vadd.xlane.f32.xlu1 %v642_v30  ;;  %v971_v30 = vlaneseq }
 0x1e2   : > { %697 = vadd.xlane.f32.xlu0 %v641_v31 }
 0x1e5   : > { %671 = vadd.xlane.f32.xlu1 %v628_v32 }
 0x1e6   : > { %669 = vadd.xlane.f32.xlu0 %v627_v33 }
 0x1e9   : > { %703 = vadd.xlane.f32.xlu1 %v644_v34 }
 0x1ea   : > { %701 = vadd.xlane.f32.xlu0 %v643_v35 }
 0x1ed   : > { %579 = vadd.xlane.f32.xlu1 %v2420_v36 }
 0x1ee   : > { %577 = vadd.xlane.f32.xlu0 %v2423_v37 }
 0x1f1   : > { %611 = vadd.xlane.f32.xlu1 %v2428_v38 }
 0x1f2   : > { %609 = vadd.xlane.f32.xlu0 %v2431_v39 }
 0x1f5   : > { %583 = vadd.xlane.f32.xlu1 %v2436_v40 }
 0x1f6   : > { %581 = vadd.xlane.f32.xlu0 %v2439_v41 }
 0x1f9   : > { %615 = vadd.xlane.f32.xlu1 %v2444_v42 }
 0x1fa   : > { %613 = vadd.xlane.f32.xlu0 %v2447_v43 }
 0x1fd   : > { %675 = vadd.xlane.f32.xlu1 %v630_v52 }
 0x1fe   : > { %673 = vadd.xlane.f32.xlu0 %v629_v53 }
 0x201   : > { %707 = vadd.xlane.f32.xlu1 %v646_v54 }
 0x202   : > { %705 = vadd.xlane.f32.xlu0 %v645_v55 }
 0x205   : > { %679 = vadd.xlane.f32.xlu1 %v632_v56 }
 0x206   : > { %677 = vadd.xlane.f32.xlu0 %v631_v57 }
 0x209   : > { %711 = vadd.xlane.f32.xlu1 %v648_v58 }
 0x20a   : > { %709 = vadd.xlane.f32.xlu0 %v647_v59  ;;  %v972_v59 = vshrl.u32 %v971_v30, 7 }
 0x21a   : > { %v586_v62 = vpop.xlane.xlu1 %585 }
 0x21b   : > { %v554_v1 = vpop.xlane.xlu0 %553  ;;  %v2471_v14 = vmul.f32 0.0078125, %v586_v62 }
 0x21c   : > { %v2467_v12 = vmul.f32 0.0078125, %v554_v1 }
 0x21d   : > { %v793_v34 = vmul.f32 %v2471_v14, %v2471_v14 }
 0x21e   : > { %v588_v4 = vpop.xlane.xlu1 %587  ;;  %v777_v18 = vmul.f32 %v2467_v12, %v2467_v12 }
 0x21f   : > { %v556_v7 = vpop.xlane.xlu0 %555  ;;  %v2473_v15 = vmul.f32 0.0078125, %v588_v4 }
 0x220   : > { %v2469_v13 = vmul.f32 0.0078125, %v556_v7 }
 0x221   : > { %v794_v35 = vmul.f32 %v2473_v15, %v2473_v15 }
 0x222   : > { %v560_v8 = vpop.xlane.xlu1 %559  ;;  %v778_v19 = vmul.f32 %v2469_v13, %v2469_v13 }
 0x223   : > { %v558_v9 = vpop.xlane.xlu0 %557  ;;  %v2479_v31 = vmul.f32 0.0078125, %v560_v8 }
 0x224   : > { %v2485_v52 = vmul.f32 0.0078125, %v558_v9 }
 0x225   : > { %v780_v62 = vmul.f32 %v2479_v31, %v2479_v31 }
 0x226   : > { %v592_v10 = vpop.xlane.xlu1 %591  ;;  %v779_v7 = vmul.f32 %v2485_v52, %v2485_v52 }
 0x227   : > { %v590_v11 = vpop.xlane.xlu0 %589  ;;  %v2491_v8 = vmul.f32 0.0078125, %v592_v10 }
 0x228   : > { %v2493_v9 = vmul.f32 0.0078125, %v590_v11 }
 0x22a   : > { %v652_v16 = vpop.xlane.xlu1 %651  ;;  %v795_v10 = vmul.f32 %v2493_v9, %v2493_v9 }
 0x22b   : > { %v650_v17 = vpop.xlane.xlu0 %649  ;;  %v746_v28 = vmul.f32 0.0078125, %v652_v16 }
 0x22c   : > { %v745_v29 = vmul.f32 0.0078125, %v650_v17 }
 0x22d   : > { %v810_v32 = vsub.f32 %v746_v28, %v778_v19 }
 0x22e   : > { %v809_v33 = vsub.f32 %v745_v29, %v777_v18  ;;  %v684_v53 = vpop.xlane.xlu1 %683  ;;  %v520_v18 = vld [vmem:[#allocation2 + $0x1] sm:$0x1] }
 0x22f   : > { %v682_v54 = vpop.xlane.xlu0 %681  ;;  %v874_v55 = vadd.f32 1e-06, %v810_v32  ;;  %v762_v57 = vmul.f32 0.0078125, %v684_v53 }
 0x230   : > { %v873_v56 = vadd.f32 1e-06, %v809_v33  ;;  %v761_v58 = vmul.f32 0.0078125, %v682_v54  ;;  %v973_v54 = vsub.s32 0, %v972_v59  ;;  %v841_v59 = vsub.f32 %v2279_v45, %v2467_v12 }
 0x231   : > { %1740 = vrsqrt.f32 %v874_v55  ;;  %v826_v1 = vsub.f32 %v762_v57, %v794_v35  ;;  %v969_v35 = vadd.f32 1.0, %v520_v18 }
 0x232   : > { %v825_v4 = vsub.f32 %v761_v58, %v793_v34  ;;  %1742 = vrsqrt.f32 %v873_v56  ;;  %v656_v16 = vpop.xlane.xlu1 %655  ;;  %v796_v34 = vmul.f32 %v2491_v8, %v2491_v8 }
 0x233   : > { %v654_v17 = vpop.xlane.xlu0 %653  ;;  %v890_v19 = vadd.f32 1e-06, %v826_v1  ;;  %v748_v29 = vmul.f32 0.0078125, %v656_v16 }
 0x234   : > { %v889_v28 = vadd.f32 1e-06, %v825_v4  ;;  %v747_v30 = vmul.f32 0.0078125, %v654_v17  ;;  %v2501_v17 = vrot.slane %v969_v35, %v973_v54 }
 0x235   : > { %1744 = vrsqrt.f32 %v890_v19  ;;  %v812_v32 = vsub.f32 %v748_v29, %v780_v62  ;;  %v842_v62 = vsub.f32 %v2287_v47, %v2469_v13 }
 0x236   : > { %v811_v33 = vsub.f32 %v747_v30, %v779_v7  ;;  %1746 = vrsqrt.f32 %v889_v28  ;;  %v688_v11 = vpop.xlane.xlu1 %687 }
 0x237   : > { %v686_v53 = vpop.xlane.xlu0 %685  ;;  %v876_v55 = vadd.f32 1e-06, %v812_v32  ;;  %v764_v57 = vmul.f32 0.0078125, %v688_v11  ;;  %v2505_v32 = vld [vmem:[#allocation2] ss:$0 sm:$0xff] }
 0x238   : > { %v875_v56 = vadd.f32 1e-06, %v811_v33  ;;  %v763_v58 = vmul.f32 0.0078125, %v686_v53  ;;  %v858_v33 = vsub.f32 %v2284_v46, %v2473_v15  ;;  %v857_v53 = vsub.f32 %v2276_v44, %v2471_v14 }
 0x239   : > { %1748 = vrsqrt.f32 %v876_v55  ;;  %v828_v1 = vsub.f32 %v764_v57, %v796_v34  ;;  %v844_v55 = vsub.f32 %v2292_v48, %v2479_v31  ;;  %v860_v48 = vsub.f32 %v2300_v50, %v2491_v8 }
 0x23a   : > { %v827_v4 = vsub.f32 %v763_v58, %v795_v10  ;;  %1750 = vrsqrt.f32 %v875_v56  ;;  %v564_v7 = vpop.xlane.xlu1 %563 }
 0x23b   : > { %v562_v16 = vpop.xlane.xlu0 %561  ;;  %v1741_v18 = vpop.eup %1740  ;;  %v892_v19 = vadd.f32 1e-06, %v828_v1 }
 0x23c   : > { %v891_v28 = vadd.f32 1e-06, %v827_v4  ;;  %v1743_v29 = vpop.eup %1742  ;;  %v938_v30 = vmul.f32 %v1741_v18, %v842_v62  ;;  %v843_v4 = vsub.f32 %v2295_v49, %v2485_v52  ;;  %v859_v49 = vsub.f32 %v2303_v51, %v2493_v9 }
 0x23d   : > { %1752 = vrsqrt.f32 %v892_v19  ;;  %v937_v34 = vmul.f32 %v1743_v29, %v841_v59  ;;  %v2528_v52 = vmul.f32 0.0078125, %v564_v7 }
 0x23e   : > { %1754 = vrsqrt.f32 %v891_v28  ;;  %v596_v47 = vpop.xlane.xlu1 %595  ;;  %v977_v35 = vmul.f32 %v2501_v17, %v938_v30 }
 0x23f   : > { %v594_v13 = vpop.xlane.xlu0 %593  ;;  %v1745_v10 = vpop.eup %1744  ;;  %v976_v45 = vmul.f32 %v2501_v17, %v937_v34  ;;  %v2530_v34 = vmul.f32 0.0078125, %v562_v16  ;;  %v782_v16 = vmul.f32 %v2528_v52, %v2528_v52 }
 0x240   : > { %v1747_v11 = vpop.eup %1746  ;;  %v1015_v12 = vadd.f32 %v2505_v32, %v977_v35  ;;  %v954_v54 = vmul.f32 %v1745_v10, %v858_v33 }
 0x241   : > { %v1014_v56 = vadd.f32 %v2505_v32, %v976_v45  ;;  %v953_v57 = vmul.f32 %v1747_v11, %v857_v53  ;;  %v2534_v53 = vmul.f32 0.0078125, %v596_v47  ;;  %v2536_v45 = vmul.f32 0.0078125, %v594_v13 }
 0x242   : > { %v568_v46 = vpop.xlane.xlu1 %567  ;;  %v993_v58 = vmul.f32 %v2501_v17, %v954_v54 }
 0x243   : > { %v566_v15 = vpop.xlane.xlu0 %565  ;;  %v1749_v1 = vpop.eup %1748  ;;  %v1046_v14 = vpack.c.bf16 %v1015_v12, %v1014_v56  ;;  %v992_v62 = vmul.f32 %v2501_v17, %v953_v57 }
 0x244   : > { %v1751_v44 = vpop.eup %1750  ;;  %v1031_v18 = vadd.f32 %v2505_v32, %v993_v58  ;;  %v940_v19 = vmul.f32 %v1749_v1, %v844_v55  ;;  %v781_v55 = vmul.f32 %v2530_v34, %v2530_v34  ;;  %v2546_v1 = vmul.f32 0.0078125, %v568_v46 }
 0x245   : > { %1549 = vmatprep.mubr.bf16.mxu0 %v1046_v14  ;;  %v1030_v29 = vadd.f32 %v2505_v32, %v992_v62  ;;  %v939_v59 = vmul.f32 %v1751_v44, %v843_v4  ;;  %v798_v14 = vmul.f32 %v2534_v53, %v2534_v53  ;;  %v797_v62 = vmul.f32 %v2536_v45, %v2536_v45 }
 0x246   : > { %v600_v31 = vpop.xlane.xlu1 %599  ;;  %v979_v30 = vmul.f32 %v2501_v17, %v940_v19 }
 0x247   : > { %v598_v28 = vpop.xlane.xlu0 %597  ;;  %v1753_v33 = vpop.eup %1752  ;;  %v1054_v10 = vpack.c.bf16 %v1031_v18, %v1030_v29  ;;  %v978_v50 = vmul.f32 %v2501_v17, %v939_v59  ;;  %v2552_v18 = vmul.f32 0.0078125, %v566_v15 }
 0x248   : > { %v1755_v35 = vpop.eup %1754  ;;  %v1017_v8 = vadd.f32 %v2505_v32, %v979_v30  ;;  %v956_v11 = vmul.f32 %v1753_v33, %v860_v48 }
 0x249   : > { %1565 = vmatprep.mubr.bf16.mxu1 %v1054_v10  ;;  %v1016_v51 = vadd.f32 %v2505_v32, %v978_v50  ;;  %v955_v9 = vmul.f32 %v1755_v35, %v859_v49  ;;  %v784_v35 = vmul.f32 %v2546_v1, %v2546_v1  ;;  %v783_v15 = vmul.f32 %v2552_v18, %v2552_v18 }
 0x24a   : > { %v660_v12 = vpop.xlane.xlu1 %659  ;;  %v995_v7 = vmul.f32 %v2501_v17, %v956_v11  ;;  %v2561_v11 = vmul.f32 0.0078125, %v598_v28 }
 0x24b   : > { %v658_v54 = vpop.xlane.xlu0 %657  ;;  %v750_v56 = vmul.f32 0.0078125, %v660_v12  ;;  %v1047_v47 = vpack.c.bf16 %v1017_v8, %v1016_v51  ;;  %v994_v13 = vmul.f32 %v2501_v17, %v955_v9  ;;  %v2559_v8 = vmul.f32 0.0078125, %v600_v31 }
 0x24c   : > { %v749_v57 = vmul.f32 0.0078125, %v658_v54  ;;  %v1033_v58 = vadd.f32 %v2505_v32, %v995_v7  ;;  %v799_v31 = vmul.f32 %v2561_v11, %v2561_v11 }
 0x24d   : > { %v814_v4 = vsub.f32 %v750_v56, %v782_v16  ;;  %1550 = vmatmul.mubr.bf16.vlgmr.msra.gmra.mrb[0].mxu0 %v1047_v47  ;;  %v1032_v29 = vadd.f32 %v2505_v32, %v994_v13 }
 0x24e   : > { %v813_v44 = vsub.f32 %v749_v57, %v781_v55  ;;  %v692_v19 = vpop.xlane.xlu1 %691  ;;  %v800_v57 = vmul.f32 %v2559_v8, %v2559_v8 }
 0x24f   : > { %v690_v48 = vpop.xlane.xlu0 %689  ;;  %v878_v59 = vadd.f32 1e-06, %v814_v4  ;;  %v766_v33 = vmul.f32 0.0078125, %v692_v19  ;;  %v1055_v49 = vpack.c.bf16 %v1033_v58, %v1032_v29  ;;  %v846_v19 = vsub.f32 %v2324_v60, %v2528_v52 }
 0x250   : > { %v877_v30 = vadd.f32 1e-06, %v813_v44  ;;  %v765_v46 = vmul.f32 0.0078125, %v690_v48 }
 0x251   : > { %1756 = vrsqrt.f32 %v878_v59  ;;  %v830_v10 = vsub.f32 %v766_v33, %v798_v14  ;;  %1566 = vmatmul.mubr.bf16.vlgmr.msra.gmra.mrb[0].mxu1 %v1055_v49  ;;  %v845_v49 = vsub.f32 %v2327_v61, %v2530_v34 }
 0x252   : > { %v829_v50 = vsub.f32 %v765_v46, %v797_v62  ;;  %1758 = vrsqrt.f32 %v877_v30  ;;  %v664_v12 = vpop.xlane.xlu1 %663 }
 0x253   : > { %v662_v54 = vpop.xlane.xlu0 %661  ;;  %v894_v51 = vadd.f32 1e-06, %v830_v10  ;;  %v752_v7 = vmul.f32 0.0078125, %v664_v12  ;;  %v862_v10 = vsub.f32 %v2332_v63, %v2534_v53 }
 0x254   : > { %v893_v9 = vadd.f32 1e-06, %v829_v50  ;;  %v751_v16 = vmul.f32 0.0078125, %v662_v54 }
 0x255   : > { %1760 = vrsqrt.f32 %v894_v51  ;;  %v816_v55 = vsub.f32 %v752_v7, %v784_v35  ;;  %v861_v51 = vsub.f32 %v2335_v0, %v2536_v45  ;;  %v848_v7 = vsub.f32 %v2340_v2, %v2546_v1 }
 0x256   : > { %v815_v56 = vsub.f32 %v751_v16, %v783_v15  ;;  %1762 = vrsqrt.f32 %v893_v9  ;;  %v696_v28 = vpop.xlane.xlu1 %695  ;;  %v864_v2 = vsub.f32 %v2348_v5, %v2559_v8 }
 0x257   : > { %v694_v47 = vpop.xlane.xlu0 %693  ;;  %v880_v13 = vadd.f32 1e-06, %v816_v55  ;;  %v768_v4 = vmul.f32 0.0078125, %v696_v28 }
 0x258   : > { %v879_v58 = vadd.f32 1e-06, %v815_v56  ;;  %v767_v44 = vmul.f32 0.0078125, %v694_v47 }
 0x259   : > { %1764 = vrsqrt.f32 %v880_v13  ;;  %v832_v14 = vsub.f32 %v768_v4, %v800_v57 }
 0x25a   : > { %v831_v62 = vsub.f32 %v767_v44, %v799_v31  ;;  %1766 = vrsqrt.f32 %v879_v58  ;;  %v572_v48 = vpop.xlane.xlu1 %571  ;;  %v847_v31 = vsub.f32 %v2343_v3, %v2552_v18  ;;  %v863_v3 = vsub.f32 %v2351_v6, %v2561_v11 }
 0x25b   : > { %v570_v29 = vpop.xlane.xlu0 %569  ;;  %v1757_v59 = vpop.eup %1756  ;;  %v896_v30 = vadd.f32 1e-06, %v832_v14  ;;  %v2592_v18 = vmul.f32 0.0078125, %v572_v48 }
 0x25c   : > { %v895_v33 = vadd.f32 1e-06, %v831_v62  ;;  %v1759_v46 = vpop.eup %1758  ;;  %v942_v35 = vmul.f32 %v1757_v59, %v846_v19  ;;  %v2594_v19 = vmul.f32 0.0078125, %v570_v29 }
 0x25d   : > { %1768 = vrsqrt.f32 %v896_v30  ;;  %v941_v12 = vmul.f32 %v1759_v46, %v845_v49  ;;  %v786_v29 = vmul.f32 %v2592_v18, %v2592_v18 }
 0x25e   : > { %1770 = vrsqrt.f32 %v895_v33  ;;  %v604_v50 = vpop.xlane.xlu1 %603  ;;  %v981_v60 = vmul.f32 %v2501_v17, %v942_v35 }
 0x25f   : > { %v602_v15 = vpop.xlane.xlu0 %601  ;;  %v1761_v52 = vpop.eup %1760  ;;  %v980_v9 = vmul.f32 %v2501_v17, %v941_v12  ;;  %v2598_v46 = vmul.f32 0.0078125, %v604_v50  ;;  %v785_v12 = vmul.f32 %v2594_v19, %v2594_v19 }
 0x260   : > { %v1763_v54 = vpop.eup %1762  ;;  %v1019_v61 = vadd.f32 %v2505_v32, %v981_v60  ;;  %v958_v34 = vmul.f32 %v1761_v52, %v862_v10  ;;  %v2600_v49 = vmul.f32 0.0078125, %v602_v15 }
 0x261   : > { %v1018_v16 = vadd.f32 %v2505_v32, %v980_v9  ;;  %v957_v55 = vmul.f32 %v1763_v54, %v861_v51 }
 0x262   : > { %v576_v63 = vpop.xlane.xlu1 %575  ;;  %v997_v56 = vmul.f32 %v2501_v17, %v958_v34  ;;  %v802_v34 = vmul.f32 %v2598_v46, %v2598_v46 }
 0x263   : > { %v574_v53 = vpop.xlane.xlu0 %573  ;;  %v1765_v57 = vpop.eup %1764  ;;  %v1048_v45 = vpack.c.bf16 %v1019_v61, %v1018_v16  ;;  %v996_v28 = vmul.f32 %v2501_v17, %v957_v55  ;;  %v2610_v51 = vmul.f32 0.0078125, %v576_v63 }
 0x264   : > { %v1767_v0 = vpop.eup %1766  ;;  %v1035_v47 = vadd.f32 %v2505_v32, %v997_v56  ;;  %v944_v13 = vmul.f32 %v1765_v57, %v848_v7  ;;  %v801_v7 = vmul.f32 %v2600_v49, %v2600_v49  ;;  %v2616_v16 = vmul.f32 0.0078125, %v574_v53 }
 0x265   : > { %1553 = vmatprep.mubr.bf16.mxu0 %v1048_v45  ;;  %v1034_v4 = vadd.f32 %v2505_v32, %v996_v28  ;;  %v943_v44 = vmul.f32 %v1767_v0, %v847_v31 }
 0x266   : > { %v608_v1 = vpop.xlane.xlu1 %607  ;;  %v983_v14 = vmul.f32 %v2501_v17, %v944_v13  ;;  %v787_v53 = vmul.f32 %v2616_v16, %v2616_v16 }
 0x267   : > { %v606_v58 = vpop.xlane.xlu0 %605  ;;  %v1769_v62 = vpop.eup %1768  ;;  %v1056_v30 = vpack.c.bf16 %v1035_v47, %v1034_v4  ;;  %v982_v5 = vmul.f32 %v2501_v17, %v943_v44  ;;  %v788_v47 = vmul.f32 %v2610_v51, %v2610_v51  ;;  %v2623_v4 = vmul.f32 0.0078125, %v608_v1 }
 0x268   : > { %v1771_v59 = vpop.eup %1770  ;;  %v1021_v8 = vadd.f32 %v2505_v32, %v983_v14  ;;  %v960_v33 = vmul.f32 %v1769_v62, %v864_v2  ;;  %v2625_v44 = vmul.f32 0.0078125, %v606_v58 }
 0x269   : > { %1569 = vmatprep.mubr.bf16.mxu1 %v1056_v30  ;;  %v1020_v6 = vadd.f32 %v2505_v32, %v982_v5  ;;  %v959_v11 = vmul.f32 %v1771_v59, %v863_v3 }
 0x26a   : > { %v668_v35 = vpop.xlane.xlu1 %667  ;;  %v999_v48 = vmul.f32 %v2501_v17, %v960_v33  ;;  %v803_v1 = vmul.f32 %v2625_v44, %v2625_v44 }
 0x26b   : > { %v666_v10 = vpop.xlane.xlu0 %665  ;;  %v754_v60 = vmul.f32 0.0078125, %v668_v35  ;;  %v1049_v50 = vpack.c.bf16 %v1021_v8, %v1020_v6  ;;  %v998_v15 = vmul.f32 %v2501_v17, %v959_v11  ;;  %v804_v35 = vmul.f32 %v2623_v4, %v2623_v4 }
 0x26c   : > { %v753_v52 = vmul.f32 0.0078125, %v666_v10  ;;  %v1037_v54 = vadd.f32 %v2505_v32, %v999_v48 }
 0x26d   : > { %v818_v9 = vsub.f32 %v754_v60, %v786_v29  ;;  %1554 = vmatmul.mubr.bf16.gmra.mrb[4].mxu0 %v1049_v50  ;;  %v1036_v57 = vadd.f32 %v2505_v32, %v998_v15 }
 0x26e   : > { %v817_v61 = vsub.f32 %v753_v52, %v785_v12  ;;  %v700_v55 = vpop.xlane.xlu1 %699  ;;  %v850_v52 = vsub.f32 %v2372_v20, %v2592_v18 }
 0x26f   : > { %v698_v56 = vpop.xlane.xlu0 %697  ;;  %v882_v31 = vadd.f32 1e-06, %v818_v9  ;;  %v770_v45 = vmul.f32 0.0078125, %v700_v55  ;;  %v1057_v28 = vpack.c.bf16 %v1037_v54, %v1036_v57 }
 0x270   : > { %v881_v0 = vadd.f32 1e-06, %v817_v61  ;;  %v769_v63 = vmul.f32 0.0078125, %v698_v56  ;;  %v866_v56 = vsub.f32 %v2380_v22, %v2598_v46 }
 0x271   : > { %1772 = vrsqrt.f32 %v882_v31  ;;  %v834_v13 = vsub.f32 %v770_v45, %v802_v34  ;;  %1570 = vmatmul.mubr.bf16.gmra.mrb[4].mxu1 %v1057_v28 }
 0x272   : > { %v833_v2 = vsub.f32 %v769_v63, %v801_v7  ;;  %1774 = vrsqrt.f32 %v881_v0  ;;  %v672_v14 = vpop.xlane.xlu1 %671  ;;  %v849_v7 = vsub.f32 %v2375_v21, %v2594_v19  ;;  %v865_v63 = vsub.f32 %v2383_v23, %v2600_v49 }
 0x273   : > { %v670_v62 = vpop.xlane.xlu0 %669  ;;  %v898_v3 = vadd.f32 1e-06, %v834_v13  ;;  %v756_v30 = vmul.f32 0.0078125, %v672_v14 }
 0x274   : > { %v897_v59 = vadd.f32 1e-06, %v833_v2  ;;  %v755_v5 = vmul.f32 0.0078125, %v670_v62  ;;  %v851_v62 = vsub.f32 %v2391_v25, %v2616_v16  ;;  %v867_v25 = vsub.f32 %v2399_v27, %v2625_v44 }
 0x275   : > { %1776 = vrsqrt.f32 %v898_v3  ;;  %v820_v8 = vsub.f32 %v756_v30, %v788_v47  ;;  %v852_v47 = vsub.f32 %v2388_v24, %v2610_v51  ;;  %v868_v24 = vsub.f32 %v2396_v26, %v2623_v4 }
 0x276   : > { %v819_v33 = vsub.f32 %v755_v5, %v787_v53  ;;  %1778 = vrsqrt.f32 %v897_v59  ;;  %v704_v58 = vpop.xlane.xlu1 %703 }
 0x277   : > { %v702_v10 = vpop.xlane.xlu0 %701  ;;  %v884_v6 = vadd.f32 1e-06, %v820_v8  ;;  %v772_v48 = vmul.f32 0.0078125, %v704_v58 }
 0x278   : > { %v883_v11 = vadd.f32 1e-06, %v819_v33  ;;  %v771_v29 = vmul.f32 0.0078125, %v702_v10 }
 0x279   : > { %1780 = vrsqrt.f32 %v884_v6  ;;  %v836_v12 = vsub.f32 %v772_v48, %v804_v35 }
 0x27a   : > { %v835_v60 = vsub.f32 %v771_v29, %v803_v1  ;;  %1782 = vrsqrt.f32 %v883_v11  ;;  %v580_v50 = vpop.xlane.xlu1 %579 }
 0x27b   : > { %v578_v15 = vpop.xlane.xlu0 %577  ;;  %v1773_v54 = vpop.eup %1772  ;;  %v900_v9 = vadd.f32 1e-06, %v836_v12  ;;  %v2656_v16 = vmul.f32 0.0078125, %v580_v50 }
 0x27c   : > { %v899_v61 = vadd.f32 1e-06, %v835_v60  ;;  %v1775_v34 = vpop.eup %1774  ;;  %v946_v55 = vmul.f32 %v1773_v54, %v850_v52  ;;  %v2658_v58 = vmul.f32 0.0078125, %v578_v15 }
 0x27d   : > { %1784 = vrsqrt.f32 %v900_v9  ;;  %v945_v0 = vmul.f32 %v1775_v34, %v849_v7  ;;  %v790_v50 = vmul.f32 %v2656_v16, %v2656_v16 }
 0x27e   : > { %1786 = vrsqrt.f32 %v899_v61  ;;  %v612_v57 = vpop.xlane.xlu1 %611  ;;  %v985_v20 = vmul.f32 %v2501_v17, %v946_v55  ;;  %v789_v15 = vmul.f32 %v2658_v58, %v2658_v58 }
 0x27f   : > { %v610_v31 = vpop.xlane.xlu0 %609  ;;  %v1777_v18 = vpop.eup %1776  ;;  %v984_v28 = vmul.f32 %v2501_v17, %v945_v0  ;;  %v2662_v48 = vmul.f32 0.0078125, %v612_v57 }
 0x280   : > { %v1779_v45 = vpop.eup %1778  ;;  %v1023_v21 = vadd.f32 %v2505_v32, %v985_v20  ;;  %v962_v19 = vmul.f32 %v1777_v18, %v866_v56  ;;  %v2664_v29 = vmul.f32 0.0078125, %v610_v31 }
 0x281   : > { %v1022_v13 = vadd.f32 %v2505_v32, %v984_v28  ;;  %v961_v2 = vmul.f32 %v1779_v45, %v865_v63  ;;  %v806_v31 = vmul.f32 %v2662_v48, %v2662_v48 }
 0x282   : > { %v584_v22 = vpop.xlane.xlu1 %583  ;;  %v1001_v53 = vmul.f32 %v2501_v17, %v962_v19  ;;  %v805_v0 = vmul.f32 %v2664_v29, %v2664_v29 }
 0x283   : > { %v582_v46 = vpop.xlane.xlu0 %581  ;;  %v1781_v14 = vpop.eup %1780  ;;  %v1050_v49 = vpack.c.bf16 %v1023_v21, %v1022_v13  ;;  %v1000_v3 = vmul.f32 %v2501_v17, %v961_v2  ;;  %v2674_v55 = vmul.f32 0.0078125, %v584_v22 }
 0x284   : > { %v1783_v23 = vpop.eup %1782  ;;  %v1039_v59 = vadd.f32 %v2505_v32, %v1001_v53  ;;  %v948_v30 = vmul.f32 %v1781_v14, %v852_v47  ;;  %v2680_v20 = vmul.f32 0.0078125, %v582_v46 }
 0x285   : > { %1557 = vmatprep.mubr.bf16.mxu0 %v1050_v49  ;;  %v1038_v8 = vadd.f32 %v2505_v32, %v1000_v3  ;;  %v947_v33 = vmul.f32 %v1783_v23, %v851_v62  ;;  %v792_v13 = vmul.f32 %v2674_v55, %v2674_v55 }
 0x286   : > { %v616_v51 = vpop.xlane.xlu1 %615  ;;  %v987_v35 = vmul.f32 %v2501_v17, %v948_v30  ;;  %v791_v46 = vmul.f32 %v2680_v20, %v2680_v20 }
 0x287   : > { %v614_v5 = vpop.xlane.xlu0 %613  ;;  %v1785_v1 = vpop.eup %1784  ;;  %v1058_v6 = vpack.c.bf16 %v1039_v59, %v1038_v8  ;;  %v986_v26 = vmul.f32 %v2501_v17, %v947_v33  ;;  %v2687_v14 = vmul.f32 0.0078125, %v616_v51 }
 0x288   : > { %v1787_v10 = vpop.eup %1786  ;;  %v1025_v4 = vadd.f32 %v2505_v32, %v987_v35  ;;  %v964_v11 = vmul.f32 %v1785_v1, %v868_v24  ;;  %v2689_v62 = vmul.f32 0.0078125, %v614_v5 }
 0x289   : > { %1573 = vmatprep.mubr.bf16.mxu1 %v1058_v6  ;;  %v1024_v27 = vadd.f32 %v2505_v32, %v986_v26  ;;  %v963_v44 = vmul.f32 %v1787_v10, %v867_v25  ;;  %v808_v35 = vmul.f32 %v2687_v14, %v2687_v14 }
 0x28a   : > { %v676_v12 = vpop.xlane.xlu1 %675  ;;  %v1003_v52 = vmul.f32 %v2501_v17, %v964_v11  ;;  %v807_v51 = vmul.f32 %v2689_v62, %v2689_v62 }
 0x28b   : > { %v674_v60 = vpop.xlane.xlu0 %673  ;;  %v758_v54 = vmul.f32 0.0078125, %v676_v12  ;;  %v1051_v61 = vpack.c.bf16 %v1025_v4, %v1024_v27  ;;  %v1002_v34 = vmul.f32 %v2501_v17, %v963_v44  ;;  %v854_v12 = vsub.f32 %v2420_v36, %v2656_v16 }
 0x28c   : > { %v757_v9 = vmul.f32 0.0078125, %v674_v60  ;;  %v1041_v7 = vadd.f32 %v2505_v32, %v1003_v52  ;;  %v853_v27 = vsub.f32 %v2423_v37, %v2658_v58  ;;  %v869_v36 = vsub.f32 %v2431_v39, %v2664_v29 }
 0x28d   : > { %v822_v56 = vsub.f32 %v758_v54, %v790_v50  ;;  %1558 = vmatmul.mubr.bf16.gmra.mrb[8].mxu0 %v1051_v61  ;;  %v1040_v63 = vadd.f32 %v2505_v32, %v1002_v34 }
 0x28e   : > { %v821_v57 = vsub.f32 %v757_v9, %v789_v15  ;;  %v708_v18 = vpop.xlane.xlu1 %707  ;;  %v870_v9 = vsub.f32 %v2428_v38, %v2662_v48 }
 0x28f   : > { %v706_v45 = vpop.xlane.xlu0 %705  ;;  %v886_v28 = vadd.f32 1e-06, %v822_v56  ;;  %v774_v19 = vmul.f32 0.0078125, %v708_v18  ;;  %v1059_v22 = vpack.c.bf16 %v1041_v7, %v1040_v63 }
 0x290   : > { %v885_v21 = vadd.f32 1e-06, %v821_v57  ;;  %v773_v47 = vmul.f32 0.0078125, %v706_v45 }
 0x291   : > { %1788 = vrsqrt.f32 %v886_v28  ;;  %v838_v2 = vsub.f32 %v774_v19, %v806_v31  ;;  %1574 = vmatmul.mubr.bf16.gmra.mrb[8].mxu1 %v1059_v22  ;;  %v856_v31 = vsub.f32 %v2436_v40, %v2674_v55  ;;  %v872_v40 = vsub.f32 %v2444_v42, %v2687_v14 }
 0x292   : > { %v837_v53 = vsub.f32 %v773_v47, %v805_v0  ;;  %1790 = vrsqrt.f32 %v885_v21  ;;  %v680_v23 = vpop.xlane.xlu1 %679  ;;  %v855_v0 = vsub.f32 %v2439_v41, %v2680_v20  ;;  %v871_v41 = vsub.f32 %v2447_v43, %v2689_v62 }
 0x293   : > { %v678_v49 = vpop.xlane.xlu0 %677  ;;  %v902_v3 = vadd.f32 1e-06, %v838_v2  ;;  %v760_v30 = vmul.f32 0.0078125, %v680_v23 }
 0x294   : > { %v901_v59 = vadd.f32 1e-06, %v837_v53  ;;  %v759_v24 = vmul.f32 0.0078125, %v678_v49 }
 0x295   : > { %1792 = vrsqrt.f32 %v902_v3  ;;  %v824_v8 = vsub.f32 %v760_v30, %v792_v13  ;;  %v2730_v3 = vld [vmem:[%s2902_s15] ss:$0 sm:$0xff] }
 0x296   : > { %v823_v33 = vsub.f32 %v759_v24, %v791_v46  ;;  %1794 = vrsqrt.f32 %v901_v59  ;;  %v712_v5 = vpop.xlane.xlu1 %711 }
 0x297   : > { %v710_v1 = vpop.xlane.xlu0 %709  ;;  %v888_v25 = vadd.f32 1e-06, %v824_v8  ;;  %v776_v6 = vmul.f32 0.0078125, %v712_v5 }
 0x298   : > { %v887_v10 = vadd.f32 1e-06, %v823_v33  ;;  %v775_v26 = vmul.f32 0.0078125, %v710_v1 }
 0x299   : > { %1796 = vrsqrt.f32 %v888_v25  ;;  %v840_v4 = vsub.f32 %v776_v6, %v808_v35 }
 0x29a   : > { %v839_v11 = vsub.f32 %v775_v26, %v807_v51  ;;  %1798 = vrsqrt.f32 %v887_v10 }
 0x29b   : > { %v1789_v60 = vpop.eup %1788  ;;  %v904_v44 = vadd.f32 1e-06, %v840_v4 }
 0x29c   : > { %v903_v52 = vadd.f32 1e-06, %v839_v11  ;;  %v1791_v50 = vpop.eup %1790  ;;  %v950_v15 = vmul.f32 %v1789_v60, %v854_v12 }
 0x29d   : > { %1800 = vrsqrt.f32 %v904_v44  ;;  %v949_v54 = vmul.f32 %v1791_v50, %v853_v27 }
 0x29e   : > { %1802 = vrsqrt.f32 %v903_v52  ;;  %v989_v61 = vmul.f32 %v2501_v17, %v950_v15 }
 0x29f   : > { %v1793_v34 = vpop.eup %1792  ;;  %v988_v16 = vmul.f32 %v2501_v17, %v949_v54 }
 0x2a0   : > { %v1795_v7 = vpop.eup %1794  ;;  %v1027_v37 = vadd.f32 %v2505_v32, %v989_v61  ;;  %v966_v58 = vmul.f32 %v1793_v34, %v870_v9 }
 0x2a1   : > { %v1026_v56 = vadd.f32 %v2505_v32, %v988_v16  ;;  %v965_v57 = vmul.f32 %v1795_v7, %v869_v36 }
 0x2a2   : > { %v1005_v38 = vmul.f32 %v2501_v17, %v966_v58 }
 0x2a3   : > { %v1797_v48 = vpop.eup %1796  ;;  %v1052_v18 = vpack.c.bf16 %v1027_v37, %v1026_v56  ;;  %v1004_v39 = vmul.f32 %v2501_v17, %v965_v57 }
 0x2a4   : > { %v1799_v29 = vpop.eup %1798  ;;  %v1043_v45 = vadd.f32 %v2505_v32, %v1005_v38  ;;  %v952_v63 = vmul.f32 %v1797_v48, %v856_v31 }
 0x2a5   : > { %1561 = vmatprep.mubr.bf16.mxu0 %v1052_v18  ;;  %v1042_v28 = vadd.f32 %v2505_v32, %v1004_v39  ;;  %v951_v21 = vmul.f32 %v1799_v29, %v855_v0 }
 0x2a6   : > { %v991_v55 = vmul.f32 %v2501_v17, %v952_v63 }
 0x2a7   : > { %v1801_v19 = vpop.eup %1800  ;;  %v1060_v20 = vpack.c.bf16 %v1043_v45, %v1042_v28  ;;  %v990_v47 = vmul.f32 %v2501_v17, %v951_v21 }
 0x2a8   : > { %v1803_v22 = vpop.eup %1802  ;;  %v1029_v13 = vadd.f32 %v2505_v32, %v991_v55  ;;  %v968_v2 = vmul.f32 %v1801_v19, %v872_v40 }
 0x2a9   : > { %1577 = vmatprep.mubr.bf16.mxu1 %v1060_v20  ;;  %v1028_v53 = vadd.f32 %v2505_v32, %v990_v47  ;;  %v967_v46 = vmul.f32 %v1803_v22, %v871_v41 }
 0x2aa   : > { %v1007_v42 = vmul.f32 %v2501_v17, %v968_v2 }
 0x2ab   : > { %v1053_v14 = vpack.c.bf16 %v1029_v13, %v1028_v53  ;;  %v1006_v23 = vmul.f32 %v2501_v17, %v967_v46 }
 0x2ac   : > { %v1045_v43 = vadd.f32 %v2505_v32, %v1007_v42 }
 0x2ad   : > { %1562 = vmatmul.mubr.bf16.gmra.mrb[12].mxu0 %v1053_v14  ;;  %v1044_v62 = vadd.f32 %v2505_v32, %v1006_v23 }
 0x2af   : > { %v1061_v49 = vpack.c.bf16 %v1045_v43, %v1044_v62 }
 0x2b1   : > { %1578 = vmatmul.mubr.bf16.gmra.mrb[12].mxu1 %v1061_v49 }
 0x320   : > { %v1551_v59 = vpop.f32.mrb[0].mxu0 }
 0x321   : > { %v1176_v30 = vadd.f32 %v1551_v59, %v2730_v3  ;;  %v1167_v24 = vpop.f32.mrb[1].mxu0 }
 0x322   : > { %v1168_v17 = vadd.f32 %v2730_v3, %v1167_v24  ;;  %v1552_v8 = vpop.f32.mrb[2].mxu0 }
 0x323   : > { %1296 = vst [vmem:[%s2269_s17 + $0x10] sm:$0xff] %v1176_v30  ;;  %v1179_v32 = vadd.f32 %v1552_v8, %v2730_v3  ;;  %v1170_v33 = vpop.f32.mrb[3].mxu0 }
 0x324   : > { %1294 = vst [vmem:[%s2269_s17] sm:$0xff] %v1168_v17  ;;  %v1171_v35 = vadd.f32 %v2730_v3, %v1170_v33  ;;  %v1567_v51 = vpop.f32.mrb[0].mxu1 }
 0x325   : > { %1297 = vst [vmem:[%s2269_s17 + $0x18] sm:$0xff] %v1179_v32  ;;  %v1240_v5 = vadd.f32 %v1567_v51, %v2730_v3  ;;  %v1231_v1 = vpop.f32.mrb[1].mxu1 }
 0x326   : > { %1295 = vst [vmem:[%s2269_s17 + $0x8] sm:$0xff] %v1171_v35  ;;  %v1232_v25 = vadd.f32 %v2730_v3, %v1231_v1  ;;  %v1568_v10 = vpop.f32.mrb[2].mxu1 }
 0x327   : > { %1312 = vst [vmem:[%s2269_s17 + $0x90] sm:$0xff] %v1240_v5  ;;  %v1243_v6 = vadd.f32 %v1568_v10, %v2730_v3  ;;  %v1234_v26 = vpop.f32.mrb[3].mxu1 }
 0x328   : > { %1310 = vst [vmem:[%s2269_s17 + $0x80] sm:$0xff] %v1232_v25  ;;  %v1235_v4 = vadd.f32 %v2730_v3, %v1234_v26 }
 0x329   : > { %1313 = vst [vmem:[%s2269_s17 + $0x98] sm:$0xff] %v1243_v6 }
 0x32a   : > { %1311 = vst [vmem:[%s2269_s17 + $0x88] sm:$0xff] %v1235_v4 }
 0x340   : > { %v1555_v11 = vpop.f32.mrb[4].mxu0 }
 0x341   : > { %v1192_v12 = vadd.f32 %v1555_v11, %v2730_v3  ;;  %v1183_v60 = vpop.f32.mrb[5].mxu0 }
 0x342   : > { %v1184_v27 = vadd.f32 %v2730_v3, %v1183_v60  ;;  %v1556_v44 = vpop.f32.mrb[6].mxu0 }
 0x343   : > { %1300 = vst [vmem:[%s2269_s17 + $0x30] sm:$0xff] %v1192_v12  ;;  %v1195_v52 = vadd.f32 %v1556_v44, %v2730_v3  ;;  %v1186_v50 = vpop.f32.mrb[7].mxu0 }
 0x344   : > { %1298 = vst [vmem:[%s2269_s17 + $0x20] sm:$0xff] %v1184_v27  ;;  %v1187_v15 = vadd.f32 %v2730_v3, %v1186_v50  ;;  %v1571_v54 = vpop.f32.mrb[4].mxu1 }
 0x345   : > { %1301 = vst [vmem:[%s2269_s17 + $0x38] sm:$0xff] %v1195_v52  ;;  %v1256_v9 = vadd.f32 %v1571_v54, %v2730_v3  ;;  %v1247_v61 = vpop.f32.mrb[5].mxu1 }
 0x346   : > { %1299 = vst [vmem:[%s2269_s17 + $0x28] sm:$0xff] %v1187_v15  ;;  %v1248_v34 = vadd.f32 %v2730_v3, %v1247_v61  ;;  %v1572_v36 = vpop.f32.mrb[6].mxu1 }
 0x347   : > { %1316 = vst [vmem:[%s2269_s17 + $0xb0] sm:$0xff] %v1256_v9  ;;  %v1259_v16 = vadd.f32 %v1572_v36, %v2730_v3  ;;  %v1250_v7 = vpop.f32.mrb[7].mxu1 }
 0x348   : > { %1314 = vst [vmem:[%s2269_s17 + $0xa0] sm:$0xff] %v1248_v34  ;;  %v1251_v37 = vadd.f32 %v2730_v3, %v1250_v7 }
 0x349   : > { %1317 = vst [vmem:[%s2269_s17 + $0xb8] sm:$0xff] %v1259_v16 }
 0x34a   : > { %1315 = vst [vmem:[%s2269_s17 + $0xa8] sm:$0xff] %v1251_v37 }
 0x360   : > { %v1559_v58 = vpop.f32.mrb[8].mxu0 }
 0x361   : > { %v1208_v56 = vadd.f32 %v1559_v58, %v2730_v3  ;;  %v1199_v57 = vpop.f32.mrb[9].mxu0 }
 0x362   : > { %v1200_v31 = vadd.f32 %v2730_v3, %v1199_v57  ;;  %v1560_v38 = vpop.f32.mrb[10].mxu0 }
 0x363   : > { %1304 = vst [vmem:[%s2269_s17 + $0x50] sm:$0xff] %v1208_v56  ;;  %v1211_v48 = vadd.f32 %v1560_v38, %v2730_v3  ;;  %v1202_v0 = vpop.f32.mrb[11].mxu0 }
 0x364   : > { %1302 = vst [vmem:[%s2269_s17 + $0x40] sm:$0xff] %v1200_v31  ;;  %v1203_v18 = vadd.f32 %v2730_v3, %v1202_v0  ;;  %v1575_v39 = vpop.f32.mrb[8].mxu1 }
 0x365   : > { %1305 = vst [vmem:[%s2269_s17 + $0x58] sm:$0xff] %v1211_v48  ;;  %v1272_v29 = vadd.f32 %v1575_v39, %v2730_v3  ;;  %v1263_v45 = vpop.f32.mrb[9].mxu1 }
 0x366   : > { %1303 = vst [vmem:[%s2269_s17 + $0x48] sm:$0xff] %v1203_v18  ;;  %v1264_v63 = vadd.f32 %v2730_v3, %v1263_v45  ;;  %v1576_v28 = vpop.f32.mrb[10].mxu1 }
 0x367   : > { %1320 = vst [vmem:[%s2269_s17 + $0xd0] sm:$0xff] %v1272_v29  ;;  %v1275_v21 = vadd.f32 %v1576_v28, %v2730_v3  ;;  %v1266_v40 = vpop.f32.mrb[11].mxu1 }
 0x368   : > { %1318 = vst [vmem:[%s2269_s17 + $0xc0] sm:$0xff] %v1264_v63  ;;  %v1267_v55 = vadd.f32 %v2730_v3, %v1266_v40 }
 0x369   : > { %1321 = vst [vmem:[%s2269_s17 + $0xd8] sm:$0xff] %v1275_v21 }
 0x36a   : > { %1319 = vst [vmem:[%s2269_s17 + $0xc8] sm:$0xff] %v1267_v55 }
 0x380   : > { %v1563_v19 = vpop.f32.mrb[12].mxu0 }
 0x381   : > { %v1224_v41 = vadd.f32 %v1563_v19, %v2730_v3  ;;  %v1215_v20 = vpop.f32.mrb[13].mxu0 }
 0x382   : > { %v1216_v47 = vadd.f32 %v2730_v3, %v1215_v20  ;;  %v1564_v22 = vpop.f32.mrb[14].mxu0 }
 0x383   : > { %1308 = vst [vmem:[%s2269_s17 + $0x70] sm:$0xff] %v1224_v41  ;;  %v1227_v13 = vadd.f32 %v1564_v22, %v2730_v3  ;;  %v1218_v2 = vpop.f32.mrb[15].mxu0 }
 0x384   : > { %1306 = vst [vmem:[%s2269_s17 + $0x60] sm:$0xff] %v1216_v47  ;;  %v1219_v53 = vadd.f32 %v2730_v3, %v1218_v2  ;;  %v1579_v46 = vpop.f32.mrb[12].mxu1 }
 0x385   : > { %1309 = vst [vmem:[%s2269_s17 + $0x78] sm:$0xff] %v1227_v13  ;;  %v1288_v42 = vadd.f32 %v1579_v46, %v2730_v3  ;;  %v1279_v14 = vpop.f32.mrb[13].mxu1 }
 0x386   : > { %1307 = vst [vmem:[%s2269_s17 + $0x68] sm:$0xff] %v1219_v53  ;;  %v1280_v23 = vadd.f32 %v2730_v3, %v1279_v14  ;;  %v1580_v43 = vpop.f32.mrb[14].mxu1 }
 0x387   : > { %1324 = vst [vmem:[%s2269_s17 + $0xf0] sm:$0xff] %v1288_v42  ;;  %v1291_v62 = vadd.f32 %v1580_v43, %v2730_v3  ;;  %v1282_v49 = vpop.f32.mrb[15].mxu1 }
 0x388   : > { %1322 = vst [vmem:[%s2269_s17 + $0xe0] sm:$0xff] %v1280_v23  ;;  %v1283_v59 = vadd.f32 %v2730_v3, %v1282_v49 }
 0x389   : > { %1325 = vst [vmem:[%s2269_s17 + $0xf8] sm:$0xff] %v1291_v62 }
 0x38a   : > { %1323 = vst [vmem:[%s2269_s17 + $0xe8] sm:$0xff] %v1283_v59 }
 0x38b   : > { %1903 = shalt.err (!%p1900_p1)
}
 0x38c   : > { %s1904_s17 = scalar_lea.hbm %s2798_s30, 4096  ;;  %s1908_s16 = scalar_lea.hbm %s2904_s20, 16384 }
 0x38d   : > { %p1905_p2 = scmp.ne.s32.totalorder %s2798_s30, %s1904_s17  ;;  %p1909_p0 = scmp.lt.u32.totalorder %s2798_s30, %s2904_s20 }
 0x38e   : > { %p1910_p4 = scmp.lt.u32.totalorder %s1908_s16, %s1904_s17  ;;  %p1912_p6 = scmp.lt.u32.totalorder %s1904_s17, %s2798_s30 }
 0x38f   : > { %p1906_p5 = pnand %p1905_p2, %p2186_p8 }
 0x390   : > { %p1911_p10 = por %p1910_p4, %p1909_p0 }
 0x391   : > { %p1907_p9 = pneg %p1906_p5 }
 0x392   : > { %p1913_p11 = por %p1912_p6, %p1911_p10 }
 0x394   : > { %p1914_p13 = pnand %p1913_p11, %p1907_p9 }
 0x396   : > { %1917 = shalt.err (!%p1914_p13)
}
 0x397   : > { %s2004_s6 = smov 128   ;;  %s2005_s21 = smov 8  }
 0x398   : > { %1607 = dma.vmem_to_hbm [thread:$0]  (%p2186_p8), %s2800_s25, 4096, %s2798_s30, %s1327_s5, %s2004_s6, %s2004_s6, %s2005_s21  }
 0x399 PF: > { %s2905_s24 = sld [smem:[#allocation13_spill]]  ;;  %s2906_s19 = sld [smem:[#allocation14_spill]] }
 0x39a   : > { %p1629_p3 = scmp.ge.s32.totalorder %s1992_s28, 2 }
 0x39f   : > { %s1357_s4 = sand.u32 1, %s2905_s24   ;;  %p2907_p7 = scmp.ne.s32.totalorder %s2906_s19, 0 }
 0x3a0   : > { %s1358_s11 = scalar_lea.sflag [#allocation5], %s1357_s4 }
 0x3a1   : > { %p1621_p12 = pnand %p1629_p3, %p2907_p7 }
 0x3a3   : > { %1959 = dma.done.wait (!%p1621_p12), %s1358_s11, 4096  }
 0x3a4   : > { %1961 = vsyncadd (!%p1621_p12), %s1358_s11, 4294963200  ;;  %s23_s28 = sadd.s32 1, %s1992_s28   ;;  %s2908_s18 = sld [smem:[#allocation15_spill]] }
 0x3a5   : > { %p20_p1 = scmp.ge.s32.totalorder %s23_s28, 6   ;;  %s2909_s21 = smov %s1968_s22 }
 0x3a6   : > { %s2910_s22 = smov %s1972_s23  ;;  %s2911_s23 = smov %s2199_s2 }
 0x3a7   : > { %s2912_s24 = smov %s1984_s26  ;;  %s2913_s25 = smov %s1988_s27 }
 0x3a8   : > { %s2915_s27 = smov %s2921_s29  ;;  %22 = sbr.rel (!%p20_p1) target bundleno = 13 (0xd), region = 104 }
 0x3aa   : > { %s2914_s26 = smov %s2908_s18 }
 0x3af   :  { %1363 = vsyncpa [#allocation4], 1 }
 0x3b0   :  { %1365 = vsyncpa [#allocation4 + $0x1], 1 }
 0x3b1   :  { %1366 = vsyncpa [#allocation7], 1 }
 0x3b2   :  { %1367 = vsyncpa [#allocation5], 1 }
 0x3b3   :  { %1369 = vsyncpa [#allocation5 + $0x1], 1 }

</bundles_post_ra>
